<compile_context>
chip_gen: v6e
topology: v6e:2x2x1
jax: 0.10.0
libtpu: 0.0.40
codegen_flags: <defaults>
</compile_context>

<pallas_src>
import functools

import jax
import jax.numpy as jnp
from jax.experimental import pallas as pl
from jax.experimental.pallas import tpu as pltpu


def _round_up(n, m):
    return ((n + m - 1) // m) * m


def gnn_kernel(x_ref, adj_ref, pool_ref,
               gin_w1_ref, gin_b1_ref, gin_w2_ref, gin_b2_ref,
               bn_scale_ref, bn_shift_ref,
               fc1_w_ref, fc1_b_ref, fc2_w_ref, fc2_b_ref,
               out_ref):
    x = x_ref[...]                       # (Np, Sp) bf16 node features
    adj = adj_ref[...]                   # (Np, Np) bf16, A' = A + I (GIN eps=0)
    num_gin = gin_w1_ref.shape[0]        # hl + 2 GIN layers (static)

    for l in range(num_gin):             # static, small trip-count
        xb = x.astype(jnp.bfloat16)      # no-op at l == 0 (x already bf16)
        # GINConv:  h = nn(x + sum_{j in N(i)} x_j) == nn(A' @ x)
        h = jnp.dot(adj, xb, preferred_element_type=jnp.float32)
        # nn = Linear -> ReLU -> Linear (bf16 MXU operands, f32 accumulate)
        h = jnp.dot(h.astype(jnp.bfloat16), gin_w1_ref[l],
                    preferred_element_type=jnp.float32) + gin_b1_ref[l]
        h = jnp.maximum(h, 0.0)
        h = jnp.dot(h.astype(jnp.bfloat16), gin_w2_ref[l],
                    preferred_element_type=jnp.float32) + gin_b2_ref[l]
        # outer F.relu(...) in the module's forward
        x = jnp.maximum(h, 0.0)
        if l < num_gin - 1:
            # BatchNorm1d (eval) pre-fused on the host into scale/shift (f32)
            x = x * bn_scale_ref[l] + bn_shift_ref[l]

    # scatter_add(x, data.batch, dim=0) expressed as a dense pooling matmul
    g = jnp.dot(pool_ref[...], x.astype(jnp.bfloat16),
                preferred_element_type=jnp.float32)            # (Gp, Sp)
    g = jnp.maximum(
        jnp.dot(g.astype(jnp.bfloat16), fc1_w_ref[...],
                preferred_element_type=jnp.float32) + fc1_b_ref[...],
        0.0)
    # F.dropout(p=0.5, training=self.training) -> identity in eval mode.
    # TODO(synk): training-mode dropout would need pltpu.prng_* mask generation.
    out_ref[...] = (jnp.dot(g.astype(jnp.bfloat16), fc2_w_ref[...],
                            preferred_element_type=jnp.float32)
                    + fc2_b_ref[...])                           # (Gp, Cp) lane-dense


def _pad2(a, r, c, dtype):
    return jnp.zeros((r, c), dtype).at[:a.shape[0], :a.shape[1]].set(a.astype(dtype))


def _pad3(a, r, c, dtype):
    return (jnp.zeros((a.shape[0], r, c), dtype)
            .at[:, :a.shape[1], :a.shape[2]].set(a.astype(dtype)))


def prepare_params(params, bn_eps=1e-5):
    """One-time: pad weights to lane/MXU-friendly shapes, fuse BN to scale/shift."""
    sd = params['fc1_w'].shape[0]
    C = params['fc2_w'].shape[-1]
    Sp = _round_up(sd, 128)              # feature dim -> lane-dense intermediates
    Cp = _round_up(C, 128)               # class dim   -> lane-dense final store
    f32, bf16 = jnp.float32, jnp.bfloat16

    inv = jax.lax.rsqrt(params['bn_var'] + bn_eps)
    return dict(
        gin_w1=_pad3(params['gin_w1'], Sp, Sp, bf16),
        gin_b1=_pad3(params['gin_b1'], 1, Sp, f32),
        gin_w2=_pad3(params['gin_w2'], Sp, Sp, bf16),
        gin_b2=_pad3(params['gin_b2'], 1, Sp, f32),
        # BatchNorm1d (eval): y = x*scale + shift
        bn_scale=_pad3(params['bn_gamma'] * inv, 1, Sp, f32),
        bn_shift=_pad3(params['bn_beta'] - params['bn_mean'] * params['bn_gamma'] * inv,
                       1, Sp, f32),
        fc1_w=_pad2(params['fc1_w'], Sp, Sp, bf16),
        fc1_b=_pad2(params['fc1_b'], 1, Sp, f32),
        fc2_w=_pad2(params['fc2_w'], Sp, Cp, bf16),
        fc2_b=_pad2(params['fc2_b'], 1, Cp, f32),
    )


@functools.partial(jax.jit, static_argnames=("num_classes",))
def gnn_forward(x_emb, adj_plus_i, pool, prepared, *, num_classes):
    """Per-call: pad per-graph inputs, run the fused kernel, slice back."""
    N = x_emb.shape[0]
    G = pool.shape[0]
    Sp = prepared['fc1_w'].shape[0]
    Cp = prepared['fc2_w'].shape[1]
    L = prepared['gin_w1'].shape[0]

    Np = _round_up(max(N, 8), 128)       # node rows (lanes of A', sublanes of x)
    Gp = _round_up(G, 16)                # pooled rows -> full bf16 sublane pack
    bf16 = jnp.bfloat16

    # Padded node columns of A' and pool are zero -> padded-row garbage never
    # leaks into real outputs (see padding invariant note above).
    x_p = _pad2(x_emb, Np, Sp, bf16)
    adj_p = _pad2(adj_plus_i, Np, Np, bf16)
    pool_p = _pad2(pool, Gp, Np, bf16)

    args = (x_p, adj_p, pool_p,
            prepared['gin_w1'], prepared['gin_b1'],
            prepared['gin_w2'], prepared['gin_b2'],
            prepared['bn_scale'], prepared['bn_shift'],
            prepared['fc1_w'], prepared['fc1_b'],
            prepared['fc2_w'], prepared['fc2_b'])
    vspec = pl.BlockSpec(memory_space=pltpu.MemorySpace.VMEM)

    flops = 2 * (L * (Np * Np * Sp + 2 * Np * Sp * Sp)
                 + Gp * Np * Sp + Gp * Sp * Sp + Gp * Sp * Cp)
    bytes_accessed = sum(int(a.size) * a.dtype.itemsize for a in args) + Gp * Cp * 4

    out_p = pl.pallas_call(
        gnn_kernel,
        out_shape=jax.ShapeDtypeStruct((Gp, Cp), jnp.float32),
        in_specs=[vspec] * len(args),
        out_specs=vspec,
        cost_estimate=pl.CostEstimate(flops=flops, transcendentals=0,
                                      bytes_accessed=bytes_accessed),
    )(*args)
    return out_p[:G, :num_classes]


def gnn_reference(x_emb, adj, pool, params, bn_eps=1e-5):
    """Pure-f32 JAX reference of the original module's (eval-mode) forward."""
    x = x_emb
    L = params['gin_w1'].shape[0]
    for l in range(L):
        h = x + adj @ x
        h = jnp.maximum(h @ params['gin_w1'][l] + params['gin_b1'][l], 0.0)
        h = h @ params['gin_w2'][l] + params['gin_b2'][l]
        x = jnp.maximum(h, 0.0)
        if l < L - 1:
            inv = jax.lax.rsqrt(params['bn_var'][l] + bn_eps)
            x = (x - params['bn_mean'][l]) * inv * params['bn_gamma'][l] + params['bn_beta'][l]
    g = pool @ x
    g = jnp.maximum(g @ params['fc1_w'] + params['fc1_b'], 0.0)
    return g @ params['fc2_w'] + params['fc2_b']


if __name__ == "__main__":
    # params = {'state_dimension': 32, 'hidden_layers': 1, 'cuda': False}
    sd = 32            # state_dimension
    hl = 1             # hidden_layers -> hl + 2 = 3 GIN layers, hl + 1 = 2 BN layers
    N = 100            # total nodes in the batch of graphs (padded to 128 in wrapper)
    G = 6              # number of graphs (pooled rows, padded to 16)
    E = 2 * N          # number of directed edges
    num_classes = 41
    vocab = 1340
    L = hl + 2

    key = jax.random.PRNGKey(0)
    keys = jax.random.split(key, 8)

    # --- graph data (data.x, data.edge_index, data.batch) ---
    node_tok = jax.random.randint(keys[0], (N, 1), 0, vocab)          # data.x
    src = jax.random.randint(keys[1], (E,), 0, N)                     # edge_index[0]
    dst = jax.random.randint(keys[2], (E,), 0, N)                     # edge_index[1]
    batch = ((jnp.arange(N) * G) // N).astype(jnp.int32)              # data.batch

    # --- deterministic parameters (shapes from GNN.__init__) ---
    emb_table = jax.random.normal(keys[3], (vocab, sd), jnp.float32) * 0.1

    def lin(k, fan_in, fan_out):
        kw, kb = jax.random.split(k)
        w = jax.random.normal(kw, (fan_in, fan_out), jnp.float32) * 0.1   # (in, out)
        b = jax.random.normal(kb, (1, fan_out), jnp.float32) * 0.1
        return w, b

    gin_w1, gin_b1, gin_w2, gin_b2 = [], [], [], []
    gin_keys = jax.random.split(keys[4], 2 * L)
    for l in range(L):
        w1, b1 = lin(gin_keys[2 * l], sd, sd)
        w2, b2 = lin(gin_keys[2 * l + 1], sd, sd)
        gin_w1.append(w1); gin_b1.append(b1); gin_w2.append(w2); gin_b2.append(b2)

    params = dict(
        gin_w1=jnp.stack(gin_w1), gin_b1=jnp.stack(gin_b1),
        gin_w2=jnp.stack(gin_w2), gin_b2=jnp.stack(gin_b2),
        bn_gamma=jnp.ones((L - 1, 1, sd), jnp.float32),
        bn_beta=jnp.zeros((L - 1, 1, sd), jnp.float32),
        bn_mean=jnp.zeros((L - 1, 1, sd), jnp.float32),
        bn_var=jnp.ones((L - 1, 1, sd), jnp.float32),
    )
    params['fc1_w'], params['fc1_b'] = lin(keys[5], sd, sd)
    params['fc2_w'], params['fc2_b'] = lin(keys[6], sd, num_classes)

    # --- glue (index plumbing only): embedding lookup, dense adjacency (+I), pooling ---
    x_emb = emb_table[node_tok[:, 0]]                                   # (N, sd)
    adj = jnp.zeros((N, N), jnp.float32).at[dst, src].add(1.0)          # adj[i,j] = #edges j->i
    adj_plus_i = adj + jnp.eye(N, dtype=jnp.float32)                    # A' = A + I (GIN eps=0)
    pool = (jnp.arange(G)[:, None] == batch[None, :]).astype(jnp.float32)  # (G, N)

    # --- one-time parameter prep (padding + BN fusion), then the per-call kernel ---
    prepared = prepare_params(params)
    prepared = jax.tree_util.tree_map(jax.block_until_ready, prepared)

    out = gnn_forward(x_emb, adj_plus_i, pool, prepared, num_classes=num_classes)
    out = jax.block_until_ready(out)

    ref = gnn_reference(x_emb, adj, pool, params)
    assert out.shape == (G, num_classes) and out.dtype == jnp.float32
    assert bool(jnp.all(jnp.isfinite(out)))
    rel_err = float(jnp.max(jnp.abs(out - ref)) / (jnp.max(jnp.abs(ref)) + 1e-6))
    assert rel_err < 0.05, f"kernel/reference mismatch: rel_err={rel_err}"
    # argmax stability check (kernel feeds a classifier; bf16 rounding must not flip classes)
    assert bool(jnp.all(jnp.argmax(out, -1) == jnp.argmax(ref, -1)))
    print("KERNEL_OK")
</pallas_src>

<mosaic_0001>
module attributes {stable_mosaic.version = 11 : i64} {
  func.func @gnn_kernel(%arg0: memref<128x128xbf16, #tpu.memory_space<vmem>>, %arg1: memref<128x128xbf16, #tpu.memory_space<vmem>>, %arg2: memref<16x128xbf16, #tpu.memory_space<vmem>>, %arg3: memref<3x128x128xbf16, #tpu.memory_space<vmem>>, %arg4: memref<3x1x128xf32, #tpu.memory_space<vmem>>, %arg5: memref<3x128x128xbf16, #tpu.memory_space<vmem>>, %arg6: memref<3x1x128xf32, #tpu.memory_space<vmem>>, %arg7: memref<2x1x128xf32, #tpu.memory_space<vmem>>, %arg8: memref<2x1x128xf32, #tpu.memory_space<vmem>>, %arg9: memref<128x128xbf16, #tpu.memory_space<vmem>>, %arg10: memref<1x128xf32, #tpu.memory_space<vmem>>, %arg11: memref<128x128xbf16, #tpu.memory_space<vmem>>, %arg12: memref<1x128xf32, #tpu.memory_space<vmem>>, %arg13: memref<16x128xf32, #tpu.memory_space<vmem>>) attributes {dimension_semantics = [], scalar_prefetch = 0 : i64, scratch_operands = 0 : i64, tpu.core_type = #tpu.core_type<tc>} {
    %c0 = arith.constant 0 : index
    %c0_0 = arith.constant 0 : index
    %0 = vector.load %arg0[%c0, %c0_0] : memref<128x128xbf16, #tpu.memory_space<vmem>>, vector<128x128xbf16>
    %c0_1 = arith.constant 0 : index
    %c0_2 = arith.constant 0 : index
    %1 = vector.load %arg1[%c0_1, %c0_2] : memref<128x128xbf16, #tpu.memory_space<vmem>>, vector<128x128xbf16>
    %cst = arith.constant dense<0.000000e+00> : vector<128x128xf32>
    %2 = tpu.matmul %1, %0, %cst {dimension_numbers = #tpu.dot_dimension_numbers<[1], [0], [0], [1], [0, 0, 1, 1], [], []>} : vector<128x128xbf16>, vector<128x128xbf16>, vector<128x128xf32> -> vector<128x128xf32>
    %3 = arith.truncf %2 : vector<128x128xf32> to vector<128x128xbf16>
    %c0_3 = arith.constant 0 : index
    %c0_4 = arith.constant 0 : index
    %c0_5 = arith.constant 0 : index
    %4 = vector.load %arg3[%c0_3, %c0_4, %c0_5] : memref<3x128x128xbf16, #tpu.memory_space<vmem>>, vector<1x128x128xbf16>
    %5 = vector.shape_cast %4 : vector<1x128x128xbf16> to vector<128x128xbf16>
    %cst_6 = arith.constant dense<0.000000e+00> : vector<128x128xf32>
    %6 = tpu.matmul %3, %5, %cst_6 {dimension_numbers = #tpu.dot_dimension_numbers<[1], [0], [0], [1], [0, 0, 1, 1], [], []>} : vector<128x128xbf16>, vector<128x128xbf16>, vector<128x128xf32> -> vector<128x128xf32>
    %c0_7 = arith.constant 0 : index
    %c0_8 = arith.constant 0 : index
    %c0_9 = arith.constant 0 : index
    %7 = vector.load %arg4[%c0_7, %c0_8, %c0_9] : memref<3x1x128xf32, #tpu.memory_space<vmem>>, vector<1x1x128xf32>
    %8 = vector.shape_cast %7 : vector<1x1x128xf32> to vector<1x128xf32>
    %9 = vector.broadcast %8 : vector<1x128xf32> to vector<128x128xf32>
    %10 = arith.addf %6, %9 : vector<128x128xf32>
    %cst_10 = arith.constant 0.000000e+00 : f32
    %11 = vector.broadcast %cst_10 : f32 to vector<128x128xf32>
    %12 = arith.maximumf %10, %11 : vector<128x128xf32>
    %13 = arith.truncf %12 : vector<128x128xf32> to vector<128x128xbf16>
    %c0_11 = arith.constant 0 : index
    %c0_12 = arith.constant 0 : index
    %c0_13 = arith.constant 0 : index
    %14 = vector.load %arg5[%c0_11, %c0_12, %c0_13] : memref<3x128x128xbf16, #tpu.memory_space<vmem>>, vector<1x128x128xbf16>
    %15 = vector.shape_cast %14 : vector<1x128x128xbf16> to vector<128x128xbf16>
    %cst_14 = arith.constant dense<0.000000e+00> : vector<128x128xf32>
    %16 = tpu.matmul %13, %15, %cst_14 {dimension_numbers = #tpu.dot_dimension_numbers<[1], [0], [0], [1], [0, 0, 1, 1], [], []>} : vector<128x128xbf16>, vector<128x128xbf16>, vector<128x128xf32> -> vector<128x128xf32>
    %c0_15 = arith.constant 0 : index
    %c0_16 = arith.constant 0 : index
    %c0_17 = arith.constant 0 : index
    %17 = vector.load %arg6[%c0_15, %c0_16, %c0_17] : memref<3x1x128xf32, #tpu.memory_space<vmem>>, vector<1x1x128xf32>
    %18 = vector.shape_cast %17 : vector<1x1x128xf32> to vector<1x128xf32>
    %19 = vector.broadcast %18 : vector<1x128xf32> to vector<128x128xf32>
    %20 = arith.addf %16, %19 : vector<128x128xf32>
    %cst_18 = arith.constant 0.000000e+00 : f32
    %21 = vector.broadcast %cst_18 : f32 to vector<128x128xf32>
    %22 = arith.maximumf %20, %21 : vector<128x128xf32>
    %c0_19 = arith.constant 0 : index
    %c0_20 = arith.constant 0 : index
    %c0_21 = arith.constant 0 : index
    %23 = vector.load %arg7[%c0_19, %c0_20, %c0_21] : memref<2x1x128xf32, #tpu.memory_space<vmem>>, vector<1x1x128xf32>
    %24 = vector.shape_cast %23 : vector<1x1x128xf32> to vector<1x128xf32>
    %25 = vector.broadcast %24 : vector<1x128xf32> to vector<128x128xf32>
    %26 = arith.mulf %22, %25 : vector<128x128xf32>
    %c0_22 = arith.constant 0 : index
    %c0_23 = arith.constant 0 : index
    %c0_24 = arith.constant 0 : index
    %27 = vector.load %arg8[%c0_22, %c0_23, %c0_24] : memref<2x1x128xf32, #tpu.memory_space<vmem>>, vector<1x1x128xf32>
    %28 = vector.shape_cast %27 : vector<1x1x128xf32> to vector<1x128xf32>
    %29 = vector.broadcast %28 : vector<1x128xf32> to vector<128x128xf32>
    %30 = arith.addf %26, %29 : vector<128x128xf32>
    %31 = arith.truncf %30 : vector<128x128xf32> to vector<128x128xbf16>
    %cst_25 = arith.constant dense<0.000000e+00> : vector<128x128xf32>
    %32 = tpu.matmul %1, %31, %cst_25 {dimension_numbers = #tpu.dot_dimension_numbers<[1], [0], [0], [1], [0, 0, 1, 1], [], []>} : vector<128x128xbf16>, vector<128x128xbf16>, vector<128x128xf32> -> vector<128x128xf32>
    %33 = arith.truncf %32 : vector<128x128xf32> to vector<128x128xbf16>
    %c1 = arith.constant 1 : index
    %c0_26 = arith.constant 0 : index
    %c0_27 = arith.constant 0 : index
    %34 = vector.load %arg3[%c1, %c0_26, %c0_27] : memref<3x128x128xbf16, #tpu.memory_space<vmem>>, vector<1x128x128xbf16>
    %35 = vector.shape_cast %34 : vector<1x128x128xbf16> to vector<128x128xbf16>
    %cst_28 = arith.constant dense<0.000000e+00> : vector<128x128xf32>
    %36 = tpu.matmul %33, %35, %cst_28 {dimension_numbers = #tpu.dot_dimension_numbers<[1], [0], [0], [1], [0, 0, 1, 1], [], []>} : vector<128x128xbf16>, vector<128x128xbf16>, vector<128x128xf32> -> vector<128x128xf32>
    %c1_29 = arith.constant 1 : index
    %c0_30 = arith.constant 0 : index
    %c0_31 = arith.constant 0 : index
    %37 = vector.load %arg4[%c1_29, %c0_30, %c0_31] : memref<3x1x128xf32, #tpu.memory_space<vmem>>, vector<1x1x128xf32>
    %38 = vector.shape_cast %37 : vector<1x1x128xf32> to vector<1x128xf32>
    %39 = vector.broadcast %38 : vector<1x128xf32> to vector<128x128xf32>
    %40 = arith.addf %36, %39 : vector<128x128xf32>
    %cst_32 = arith.constant 0.000000e+00 : f32
    %41 = vector.broadcast %cst_32 : f32 to vector<128x128xf32>
    %42 = arith.maximumf %40, %41 : vector<128x128xf32>
    %43 = arith.truncf %42 : vector<128x128xf32> to vector<128x128xbf16>
    %c1_33 = arith.constant 1 : index
    %c0_34 = arith.constant 0 : index
    %c0_35 = arith.constant 0 : index
    %44 = vector.load %arg5[%c1_33, %c0_34, %c0_35] : memref<3x128x128xbf16, #tpu.memory_space<vmem>>, vector<1x128x128xbf16>
    %45 = vector.shape_cast %44 : vector<1x128x128xbf16> to vector<128x128xbf16>
    %cst_36 = arith.constant dense<0.000000e+00> : vector<128x128xf32>
    %46 = tpu.matmul %43, %45, %cst_36 {dimension_numbers = #tpu.dot_dimension_numbers<[1], [0], [0], [1], [0, 0, 1, 1], [], []>} : vector<128x128xbf16>, vector<128x128xbf16>, vector<128x128xf32> -> vector<128x128xf32>
    %c1_37 = arith.constant 1 : index
    %c0_38 = arith.constant 0 : index
    %c0_39 = arith.constant 0 : index
    %47 = vector.load %arg6[%c1_37, %c0_38, %c0_39] : memref<3x1x128xf32, #tpu.memory_space<vmem>>, vector<1x1x128xf32>
    %48 = vector.shape_cast %47 : vector<1x1x128xf32> to vector<1x128xf32>
    %49 = vector.broadcast %48 : vector<1x128xf32> to vector<128x128xf32>
    %50 = arith.addf %46, %49 : vector<128x128xf32>
    %cst_40 = arith.constant 0.000000e+00 : f32
    %51 = vector.broadcast %cst_40 : f32 to vector<128x128xf32>
    %52 = arith.maximumf %50, %51 : vector<128x128xf32>
    %c1_41 = arith.constant 1 : index
    %c0_42 = arith.constant 0 : index
    %c0_43 = arith.constant 0 : index
    %53 = vector.load %arg7[%c1_41, %c0_42, %c0_43] : memref<2x1x128xf32, #tpu.memory_space<vmem>>, vector<1x1x128xf32>
    %54 = vector.shape_cast %53 : vector<1x1x128xf32> to vector<1x128xf32>
    %55 = vector.broadcast %54 : vector<1x128xf32> to vector<128x128xf32>
    %56 = arith.mulf %52, %55 : vector<128x128xf32>
    %c1_44 = arith.constant 1 : index
    %c0_45 = arith.constant 0 : index
    %c0_46 = arith.constant 0 : index
    %57 = vector.load %arg8[%c1_44, %c0_45, %c0_46] : memref<2x1x128xf32, #tpu.memory_space<vmem>>, vector<1x1x128xf32>
    %58 = vector.shape_cast %57 : vector<1x1x128xf32> to vector<1x128xf32>
    %59 = vector.broadcast %58 : vector<1x128xf32> to vector<128x128xf32>
    %60 = arith.addf %56, %59 : vector<128x128xf32>
    %61 = arith.truncf %60 : vector<128x128xf32> to vector<128x128xbf16>
    %cst_47 = arith.constant dense<0.000000e+00> : vector<128x128xf32>
    %62 = tpu.matmul %1, %61, %cst_47 {dimension_numbers = #tpu.dot_dimension_numbers<[1], [0], [0], [1], [0, 0, 1, 1], [], []>} : vector<128x128xbf16>, vector<128x128xbf16>, vector<128x128xf32> -> vector<128x128xf32>
    %63 = arith.truncf %62 : vector<128x128xf32> to vector<128x128xbf16>
    %c2 = arith.constant 2 : index
    %c0_48 = arith.constant 0 : index
    %c0_49 = arith.constant 0 : index
    %64 = vector.load %arg3[%c2, %c0_48, %c0_49] : memref<3x128x128xbf16, #tpu.memory_space<vmem>>, vector<1x128x128xbf16>
    %65 = vector.shape_cast %64 : vector<1x128x128xbf16> to vector<128x128xbf16>
    %cst_50 = arith.constant dense<0.000000e+00> : vector<128x128xf32>
    %66 = tpu.matmul %63, %65, %cst_50 {dimension_numbers = #tpu.dot_dimension_numbers<[1], [0], [0], [1], [0, 0, 1, 1], [], []>} : vector<128x128xbf16>, vector<128x128xbf16>, vector<128x128xf32> -> vector<128x128xf32>
    %c2_51 = arith.constant 2 : index
    %c0_52 = arith.constant 0 : index
    %c0_53 = arith.constant 0 : index
    %67 = vector.load %arg4[%c2_51, %c0_52, %c0_53] : memref<3x1x128xf32, #tpu.memory_space<vmem>>, vector<1x1x128xf32>
    %68 = vector.shape_cast %67 : vector<1x1x128xf32> to vector<1x128xf32>
    %69 = vector.broadcast %68 : vector<1x128xf32> to vector<128x128xf32>
    %70 = arith.addf %66, %69 : vector<128x128xf32>
    %cst_54 = arith.constant 0.000000e+00 : f32
    %71 = vector.broadcast %cst_54 : f32 to vector<128x128xf32>
    %72 = arith.maximumf %70, %71 : vector<128x128xf32>
    %73 = arith.truncf %72 : vector<128x128xf32> to vector<128x128xbf16>
    %c2_55 = arith.constant 2 : index
    %c0_56 = arith.constant 0 : index
    %c0_57 = arith.constant 0 : index
    %74 = vector.load %arg5[%c2_55, %c0_56, %c0_57] : memref<3x128x128xbf16, #tpu.memory_space<vmem>>, vector<1x128x128xbf16>
    %75 = vector.shape_cast %74 : vector<1x128x128xbf16> to vector<128x128xbf16>
    %cst_58 = arith.constant dense<0.000000e+00> : vector<128x128xf32>
    %76 = tpu.matmul %73, %75, %cst_58 {dimension_numbers = #tpu.dot_dimension_numbers<[1], [0], [0], [1], [0, 0, 1, 1], [], []>} : vector<128x128xbf16>, vector<128x128xbf16>, vector<128x128xf32> -> vector<128x128xf32>
    %c2_59 = arith.constant 2 : index
    %c0_60 = arith.constant 0 : index
    %c0_61 = arith.constant 0 : index
    %77 = vector.load %arg6[%c2_59, %c0_60, %c0_61] : memref<3x1x128xf32, #tpu.memory_space<vmem>>, vector<1x1x128xf32>
    %78 = vector.shape_cast %77 : vector<1x1x128xf32> to vector<1x128xf32>
    %79 = vector.broadcast %78 : vector<1x128xf32> to vector<128x128xf32>
    %80 = arith.addf %76, %79 : vector<128x128xf32>
    %cst_62 = arith.constant 0.000000e+00 : f32
    %81 = vector.broadcast %cst_62 : f32 to vector<128x128xf32>
    %82 = arith.maximumf %80, %81 : vector<128x128xf32>
    %c0_63 = arith.constant 0 : index
    %c0_64 = arith.constant 0 : index
    %83 = vector.load %arg2[%c0_63, %c0_64] : memref<16x128xbf16, #tpu.memory_space<vmem>>, vector<16x128xbf16>
    %84 = arith.truncf %82 : vector<128x128xf32> to vector<128x128xbf16>
    %cst_65 = arith.constant dense<0.000000e+00> : vector<16x128xf32>
    %85 = tpu.matmul %83, %84, %cst_65 {dimension_numbers = #tpu.dot_dimension_numbers<[1], [0], [0], [1], [0, 0, 1, 1], [], []>} : vector<16x128xbf16>, vector<128x128xbf16>, vector<16x128xf32> -> vector<16x128xf32>
    %86 = arith.truncf %85 : vector<16x128xf32> to vector<16x128xbf16>
    %c0_66 = arith.constant 0 : index
    %c0_67 = arith.constant 0 : index
    %87 = vector.load %arg9[%c0_66, %c0_67] : memref<128x128xbf16, #tpu.memory_space<vmem>>, vector<128x128xbf16>
    %cst_68 = arith.constant dense<0.000000e+00> : vector<16x128xf32>
    %88 = tpu.matmul %86, %87, %cst_68 {dimension_numbers = #tpu.dot_dimension_numbers<[1], [0], [0], [1], [0, 0, 1, 1], [], []>} : vector<16x128xbf16>, vector<128x128xbf16>, vector<16x128xf32> -> vector<16x128xf32>
    %c0_69 = arith.constant 0 : index
    %c0_70 = arith.constant 0 : index
    %89 = vector.load %arg10[%c0_69, %c0_70] : memref<1x128xf32, #tpu.memory_space<vmem>>, vector<1x128xf32>
    %90 = vector.broadcast %89 : vector<1x128xf32> to vector<16x128xf32>
    %91 = arith.addf %88, %90 : vector<16x128xf32>
    %cst_71 = arith.constant 0.000000e+00 : f32
    %92 = vector.broadcast %cst_71 : f32 to vector<16x128xf32>
    %93 = arith.maximumf %91, %92 : vector<16x128xf32>
    %94 = arith.truncf %93 : vector<16x128xf32> to vector<16x128xbf16>
    %c0_72 = arith.constant 0 : index
    %c0_73 = arith.constant 0 : index
    %95 = vector.load %arg11[%c0_72, %c0_73] : memref<128x128xbf16, #tpu.memory_space<vmem>>, vector<128x128xbf16>
    %cst_74 = arith.constant dense<0.000000e+00> : vector<16x128xf32>
    %96 = tpu.matmul %94, %95, %cst_74 {dimension_numbers = #tpu.dot_dimension_numbers<[1], [0], [0], [1], [0, 0, 1, 1], [], []>} : vector<16x128xbf16>, vector<128x128xbf16>, vector<16x128xf32> -> vector<16x128xf32>
    %c0_75 = arith.constant 0 : index
    %c0_76 = arith.constant 0 : index
    %97 = vector.load %arg12[%c0_75, %c0_76] : memref<1x128xf32, #tpu.memory_space<vmem>>, vector<1x128xf32>
    %98 = vector.broadcast %97 : vector<1x128xf32> to vector<16x128xf32>
    %99 = arith.addf %96, %98 : vector<16x128xf32>
    %c0_77 = arith.constant 0 : index
    %c0_78 = arith.constant 0 : index
    %100 = vector.load %arg13[%c0_77, %c0_78] : memref<16x128xf32, #tpu.memory_space<vmem>>, vector<16x128xf32>
    tpu.vector_store %arg13[%c0_77, %c0_78], %99 {strides = array<i32>} : memref<16x128xf32, #tpu.memory_space<vmem>>, vector<16x128xf32>,
    return
  }
}

</mosaic_0001>

<bundles_post_ra>
// kernel: gnn_forward.1
= control target key start
LH: loop header
LB: loop body
LE: loop exit
PB: predicated region body
PF: predicated region fallthrough
CT: control target
= control target key end

     0   :  { %18 = vsyncpa [#allocation3], 0  ;;  %s3404_s0 = inlined_call_operand.vmem [shape: bf16[128,128], index: 0, kind: input, shape index: {}]   ;;  %s3405_s1 = inlined_call_operand.vmem [shape: bf16[128,128], index: 1, kind: input, shape index: {}]   ;;  %s3406_s2 = inlined_call_operand.vmem [shape: bf16[16,128], index: 2, kind: input, shape index: {}]   ;;  %s3407_s3 = inlined_call_operand.vmem [shape: bf16[3,128,128], index: 3, kind: input, shape index: {}]   ;;  %s3408_s4 = inlined_call_operand.vmem [shape: f32[3,1,128], index: 4, kind: input, shape index: {}]   ;;  %s3409_s5 = inlined_call_operand.vmem [shape: bf16[3,128,128], index: 5, kind: input, shape index: {}]   ;;  %s3410_s6 = inlined_call_operand.vmem [shape: f32[3,1,128], index: 6, kind: input, shape index: {}]   ;;  %s3411_s7 = inlined_call_operand.vmem [shape: f32[2,1,128], index: 7, kind: input, shape index: {}]   ;;  %s3412_s8 = inlined_call_operand.vmem [shape: f32[2,1,128], index: 8, kind: input, shape index: {}]   ;;  %s3413_s9 = inlined_call_operand.hbm [shape: bf16[128,128], index: 9, kind: input, shape index: {}]   ;;  %s3414_s10 = inlined_call_operand.vmem [shape: f32[1,128], index: 10, kind: input, shape index: {}]   ;;  %s3415_s11 = inlined_call_operand.hbm [shape: bf16[128,128], index: 11, kind: input, shape index: {}]   ;;  %s3416_s12 = inlined_call_operand.vmem [shape: f32[1,128], index: 12, kind: input, shape index: {}]   ;;  %s3417_s13 = inlined_call_operand.vmem [shape: f32[16,128], index: 13, kind: output, shape index: {}]  }
   0x1   :  { %19 = vsyncpa [#allocation5], 0  ;;  %s2875_s25 = smov [#allocation2]  }
   0x2   :  { %s43_s26 = sshll.u32 %s2875_s25, 4  ;;  %s44_s26 = int_to_ptr.vmem [resolvable:$true] %s43_s26 }
   0x3   :  { %s2839_s27 = scalar_lea.vmem %s44_s26, 1024  ;;  %p2844_p1 = scmp.lt.s32.totalorder %s44_s26, %s44_s26 }
   0x4   :  { %p2840_p0 = scmp.ne.s32.totalorder %s44_s26, %s2839_s27  ;;  %p2845_p2 = scmp.lt.s32.totalorder %s2839_s27, %s2839_s27 }
   0x6   :  { %p2846_p3 = por %p2845_p2, %p2844_p1 }
   0x8   :  { %p2847_p4 = pnand %p2846_p3, %p2840_p0 }
   0xa   :  { %2850 = shalt.err (!%p2847_p4)
}
   0xb   :  { %s2876_s28 = smov 64   ;;  %s2877_s29 = smov 4  }
   0xc   :  { %49 = dma.hbm_to_vmem [thread:$0]  %s3413_s9, 1024, %s44_s26, [#allocation3], %s2876_s28, %s2876_s28, %s2877_s29  }
   0xd   :  { %s2878_s15 = smov [#allocation4]  }
   0xe   :  { %s57_s16 = sshll.u32 %s2878_s15, 4  ;;  %s58_s16 = int_to_ptr.vmem [resolvable:$true] %s57_s16 }
   0xf   :  { %s2859_s17 = scalar_lea.vmem %s58_s16, 1024  ;;  %p2864_p6 = scmp.lt.s32.totalorder %s58_s16, %s58_s16 }
  0x10   :  { %p2860_p5 = scmp.ne.s32.totalorder %s58_s16, %s2859_s17  ;;  %p2865_p7 = scmp.lt.s32.totalorder %s2859_s17, %s2859_s17 }
  0x12   :  { %p2866_p8 = por %p2865_p7, %p2864_p6 }
  0x14   :  { %p2867_p9 = pnand %p2866_p8, %p2860_p5 }
  0x16   :  { %2870 = shalt.err (!%p2867_p9)
}
  0x17   :  { %63 = dma.hbm_to_vmem [thread:$0]  %s3415_s11, 1024, %s58_s16, [#allocation5], %s2876_s28, %s2876_s28, %s2877_s29  }
  0x18   :  { %2871 = dma.done.wait [#allocation3], 1024  }
  0x19   :  { %2872 = vsyncadd [#allocation3], 4294966272 }
  0x1a   :  { %2873 = dma.done.wait [#allocation5], 1024  }
  0x1b   :  { %2874 = vsyncadd [#allocation5], 4294966272  ;;  %v2743_v0 = vld [vmem:[%s3404_s0 + $0x38] sm:$0xff]   ;;  %v2744_v1 = vld [vmem:[%s3404_s0 + $0x30] sm:$0xff]   ;;  %vm2880_vm0 = vmmov 0  }
  0x1c   :  { %2389 = vmatprep.subr.bf16.mxu0 %v2743_v0  ;;  %v2745_v2 = vld [vmem:[%s3404_s0 + $0x28] sm:$0xff]   ;;  %v2746_v3 = vld [vmem:[%s3404_s0 + $0x20] sm:$0xff]   ;;  %v2747_v5 = vld [vmem:[%s3404_s0 + $0x18] sm:$0xff]  }
  0x1d   :  { %2390 = vmatpush3.bf16.msra.mxu0 %v2743_v0  ;;  %v2972_v4 = vld [vmem:[%s3405_s1] sm:$0xff]   ;;  %v2748_v6 = vld [vmem:[%s3404_s0 + $0x10] sm:$0xff]   ;;  %v2759_v7 = vld [vmem:[%s3407_s3 + $0x38] sm:$0xff]  }
  0x1e   :  { %2391 = vmatprep.subr.bf16.mxu0 %v2744_v1  ;;  %2405 = vmatprep.mubr.bf16.mxu0 %v2972_v4  ;;  %v2760_v8 = vld [vmem:[%s3407_s3 + $0x30] sm:$0xff]   ;;  %v2749_v9 = vld [vmem:[%s3404_s0 + $0x8] sm:$0xff]   ;;  %v2750_v11 = vld [vmem:[%s3404_s0] sm:$0xff]  }
  0x1f   :  { %2421 = vmatprep.subr.bf16.mxu1 %v2759_v7  ;;  %v2761_v10 = vld [vmem:[%s3407_s3 + $0x28] sm:$0xff]   ;;  %v2762_v12 = vld [vmem:[%s3407_s3 + $0x20] sm:$0xff]   ;;  %v2763_v13 = vld [vmem:[%s3407_s3 + $0x18] sm:$0xff]  }
  0x20   :  { %2422 = vmatpush3.bf16.msra.mxu1 %v2759_v7  ;;  %v3005_v14 = vld [vmem:[%s3405_s1 + $0x8] sm:$0xff]   ;;  %v3010_v15 = vld [vmem:[%s3405_s1 + $0x10] sm:$0xff]   ;;  %v3020_v17 = vld [vmem:[%s3405_s1 + $0x18] sm:$0xff]  }
  0x21   :  { %2392 = vmatpush3.bf16.msra.mxu0 %v2744_v1  ;;  %2423 = vmatprep.subr.bf16.mxu1 %v2760_v8  ;;  %v2764_v16 = vld [vmem:[%s3407_s3 + $0x10] sm:$0xff]   ;;  %v3025_v18 = vld [vmem:[%s3405_s1 + $0x20] sm:$0xff]   ;;  %v3032_v19 = vld [vmem:[%s3405_s1 + $0x28] sm:$0xff]  }
  0x22   :  { %2393 = vmatprep.subr.bf16.mxu0 %v2745_v2  ;;  %v3037_v20 = vld [vmem:[%s3405_s1 + $0x30] sm:$0xff]   ;;  %v3044_v21 = vld [vmem:[%s3405_s1 + $0x38] sm:$0xff]   ;;  %v2765_v22 = vld [vmem:[%s3407_s3 + $0x8] sm:$0xff]  }
  0x23   :  { %v2766_v23 = vld [vmem:[%s3407_s3] sm:$0xff]   ;;  %v2767_v24 = vld [vmem:[%s3409_s5 + $0x38] sm:$0xff]   ;;  %v2768_v25 = vld [vmem:[%s3409_s5 + $0x30] sm:$0xff]  }
  0x24   :  { %2424 = vmatpush3.bf16.msra.mxu1 %v2760_v8  ;;  %v2769_v26 = vld [vmem:[%s3409_s5 + $0x28] sm:$0xff]   ;;  %v2770_v27 = vld [vmem:[%s3409_s5 + $0x20] sm:$0xff]   ;;  %v2771_v28 = vld [vmem:[%s3409_s5 + $0x18] sm:$0xff]  }
  0x25   :  { %2394 = vmatpush3.bf16.msra.mxu0 %v2745_v2  ;;  %2425 = vmatprep.subr.bf16.mxu1 %v2761_v10  ;;  %v2772_v53 = vld [vmem:[%s3409_s5 + $0x10] sm:$0xff]   ;;  %v2773_v54 = vld [vmem:[%s3409_s5 + $0x8] sm:$0xff]   ;;  %v2774_v55 = vld [vmem:[%s3409_s5] sm:$0xff]  }
  0x26   :  { %2395 = vmatprep.subr.bf16.mxu0 %v2746_v3  ;;  %v2071_v58 = vld [vmem:[%s3408_s4] ss:$0 sm:$0xff] }
  0x28   :  { %2426 = vmatpush3.bf16.msra.mxu1 %v2761_v10 }
  0x29   :  { %2396 = vmatpush3.bf16.msra.mxu0 %v2746_v3  ;;  %2427 = vmatprep.subr.bf16.mxu1 %v2762_v12 }
  0x2a   :  { %2397 = vmatprep.subr.bf16.mxu0 %v2747_v5 }
  0x2c   :  { %2428 = vmatpush3.bf16.msra.mxu1 %v2762_v12 }
  0x2d   :  { %2398 = vmatpush3.bf16.msra.mxu0 %v2747_v5  ;;  %2429 = vmatprep.subr.bf16.mxu1 %v2763_v13 }
  0x2e   :  { %2399 = vmatprep.subr.bf16.mxu0 %v2748_v6 }
  0x30   :  { %2430 = vmatpush3.bf16.msra.mxu1 %v2763_v13 }
  0x31   :  { %2400 = vmatpush3.bf16.msra.mxu0 %v2748_v6  ;;  %2431 = vmatprep.subr.bf16.mxu1 %v2764_v16 }
  0x32   :  { %2401 = vmatprep.subr.bf16.mxu0 %v2749_v9 }
  0x34   :  { %2432 = vmatpush3.bf16.msra.mxu1 %v2764_v16 }
  0x35   :  { %2402 = vmatpush3.bf16.msra.mxu0 %v2749_v9  ;;  %2433 = vmatprep.subr.bf16.mxu1 %v2765_v22 }
  0x36   :  { %2403 = vmatprep.subr.bf16.mxu0 %v2750_v11 }
  0x38   :  { %2434 = vmatpush3.bf16.msra.mxu1 %v2765_v22 }
  0x39   :  { %2404 = vmatpush3.bf16.msra.mxu0 %v2750_v11  ;;  %2435 = vmatprep.subr.bf16.mxu1 %v2766_v23 }
  0x3a   :  { %2453 = vmatprep.subr.bf16.mxu0 %v2767_v24 }
  0x3c   :  { %2406 = vmatmul.mubr.bf16.vlgmr.msra.gmra.mxu0 %v3005_v14  ;;  %2436 = vmatpush3.bf16.msra.mxu1 %v2766_v23 }
  0x3d   :  { %2409 = vmatprep.mubr.bf16.mxu0 %v3010_v15  ;;  %2454 = vmatpush3.bf16.msra.mxu0 %v2767_v24 }
  0x3e   :  { %2455 = vmatprep.subr.bf16.mxu0 %v2768_v25 }
  0x41   :  { %2456 = vmatpush3.bf16.msra.mxu0 %v2768_v25 }
  0x42   :  { %2457 = vmatprep.subr.bf16.mxu0 %v2769_v26 }
  0x44   :  { %2410 = vmatmul.mubr.bf16.gmra.mxu0 %v3020_v17 }
  0x45   :  { %2413 = vmatprep.mubr.bf16.mxu0 %v3025_v18  ;;  %2458 = vmatpush3.bf16.msra.mxu0 %v2769_v26 }
  0x46   :  { %2459 = vmatprep.subr.bf16.mxu0 %v2770_v27 }
  0x49   :  { %2460 = vmatpush3.bf16.msra.mxu0 %v2770_v27 }
  0x4a   :  { %2461 = vmatprep.subr.bf16.mxu0 %v2771_v28 }
  0x4c   :  { %2414 = vmatmul.mubr.bf16.gmra.mxu0 %v3032_v19 }
  0x4d   :  { %2417 = vmatprep.mubr.bf16.mxu0 %v3037_v20  ;;  %2462 = vmatpush3.bf16.msra.mxu0 %v2771_v28 }
  0x4e   :  { %2463 = vmatprep.subr.bf16.mxu0 %v2772_v53 }
  0x51   :  { %2464 = vmatpush3.bf16.msra.mxu0 %v2772_v53 }
  0x52   :  { %2465 = vmatprep.subr.bf16.mxu0 %v2773_v54 }
  0x54   :  { %2418 = vmatmul.mubr.bf16.gmra.mxu0 %v3044_v21 }
  0x55   :  { %2466 = vmatpush3.bf16.msra.mxu0 %v2773_v54 }
  0x56   :  { %2467 = vmatprep.subr.bf16.mxu0 %v2774_v55 }
  0x59   :  { %2468 = vmatpush3.bf16.msra.mxu0 %v2774_v55 }
  0xfc   :  { %v2407_v29 = vpop.f32.mrf.mxu0 }
  0xfe   :  { %v235_v30 = vpop.f32.mrf.mxu0 }
 0x100   :  { %v2408_v31 = vpop.f32.mrf.mxu0 }
 0x101   :  { %v299_v34 = vpack.c.bf16 %v2408_v31, %v2407_v29 }
 0x102   :  { %v238_v32 = vpop.f32.mrf.mxu0 }
 0x103   :  { %v298_v33 = vpack.c.bf16 %v238_v32, %v235_v30 }
 0x104   :  { %v2411_v35 = vpop.f32.mrf.mxu0 }
 0x105   :  { %2437 = vmatprep.mubr.bf16.mxu1 %v298_v33 }
 0x106   :  { %v251_v36 = vpop.f32.mrf.mxu0  ;;  %2438 = vmatmul.mubr.bf16.vlgmr.msra.gmra.mxu1 %v299_v34 }
 0x108   :  { %v2412_v37 = vpop.f32.mrf.mxu0 }
 0x109   :  { %v301_v40 = vpack.c.bf16 %v2412_v37, %v2411_v35 }
 0x10a   :  { %v254_v38 = vpop.f32.mrf.mxu0 }
 0x10b   :  { %v300_v39 = vpack.c.bf16 %v254_v38, %v251_v36 }
 0x10c   :  { %v2415_v41 = vpop.f32.mrf.mxu0 }
 0x10d   :  { %2441 = vmatprep.mubr.bf16.mxu1 %v300_v39 }
 0x10e   :  { %v267_v42 = vpop.f32.mrf.mxu0  ;;  %2442 = vmatmul.mubr.bf16.gmra.mxu1 %v301_v40 }
 0x110   :  { %v2416_v43 = vpop.f32.mrf.mxu0 }
 0x111   :  { %v303_v46 = vpack.c.bf16 %v2416_v43, %v2415_v41 }
 0x112   :  { %v270_v44 = vpop.f32.mrf.mxu0 }
 0x113   :  { %v302_v45 = vpack.c.bf16 %v270_v44, %v267_v42 }
 0x114   :  { %v2419_v47 = vpop.f32.mrf.mxu0 }
 0x115   :  { %2445 = vmatprep.mubr.bf16.mxu1 %v302_v45 }
 0x116   :  { %v283_v48 = vpop.f32.mrf.mxu0  ;;  %2446 = vmatmul.mubr.bf16.gmra.mxu1 %v303_v46 }
 0x118   :  { %v2420_v49 = vpop.f32.mrf.mxu0 }
 0x119   :  { %v305_v52 = vpack.c.bf16 %v2420_v49, %v2419_v47 }
 0x11a   :  { %v286_v50 = vpop.f32.mrf.mxu0 }
 0x11b   :  { %v304_v51 = vpack.c.bf16 %v286_v50, %v283_v48 }
 0x11d   :  { %2449 = vmatprep.mubr.bf16.mxu1 %v304_v51 }
 0x11e   :  { %2450 = vmatmul.mubr.bf16.gmra.mxu1 %v305_v52 }
 0x11f   :  { %2501 = vmatprep.mubr.bf16.mxu1 %v2972_v4 }
 0x1c6   :  { %v2439_v56 = vpop.f32.mrf.mxu1 }
 0x1c7   :  { %v420_v62 = vadd.f32 %v2439_v56, %v2071_v58 }
 0x1c8   :  { %v411_v57 = vpop.f32.mrf.mxu1 }
 0x1c9   :  { %v412_v60 = vadd.f32 %v2071_v58, %v411_v57  ;;  %v476_v6 = vmax.f32 %v420_v62, 0.0  ;;  %v2775_v57 = vld [vmem:[%s3407_s3 + $0x78] sm:$0xff]   ;;  %v2780_v62 = vld [vmem:[%s3407_s3 + $0x50] sm:$0xff]  }
 0x1ca   :  { %v2440_v59 = vpop.f32.mrf.mxu1  ;;  %2517 = vmatprep.subr.bf16.mxu0 %v2775_v57 }
 0x1cb   :  { %v423_v61 = vadd.f32 %v2440_v59, %v2071_v58  ;;  %v474_v3 = vmax.f32 %v412_v60, 0.0  ;;  %v2776_v59 = vld [vmem:[%s3407_s3 + $0x70] sm:$0xff]   ;;  %v2778_v60 = vld [vmem:[%s3407_s3 + $0x60] sm:$0xff]  }
 0x1cc   :  { %v414_v63 = vpop.f32.mrf.mxu1 }
 0x1cd   :  { %v415_v0 = vadd.f32 %v2071_v58, %v414_v63  ;;  %v477_v1 = vmax.f32 %v423_v61, 0.0  ;;  %v2779_v61 = vld [vmem:[%s3407_s3 + $0x58] sm:$0xff]  }
 0x1ce   :  { %v2443_v2 = vpop.f32.mrf.mxu1 }
 0x1cf   :  { %v475_v5 = vmax.f32 %v415_v0, 0.0  ;;  %v491_v9 = vpack.c.bf16 %v477_v1, %v476_v6  ;;  %v436_v13 = vadd.f32 %v2443_v2, %v2071_v58 }
 0x1d0   :  { %v427_v7 = vpop.f32.mrf.mxu1 }
 0x1d1   :  { %v490_v8 = vpack.c.bf16 %v475_v5, %v474_v3  ;;  %v428_v11 = vadd.f32 %v2071_v58, %v427_v7  ;;  %v480_v27 = vmax.f32 %v436_v13, 0.0 }
 0x1d2   :  { %v2444_v10 = vpop.f32.mrf.mxu1 }
 0x1d3   :  { %v439_v12 = vadd.f32 %v2444_v10, %v2071_v58  ;;  %2469 = vmatprep.mubr.bf16.mxu0 %v490_v8  ;;  %v478_v25 = vmax.f32 %v428_v11, 0.0 }
 0x1d4   :  { %v430_v16 = vpop.f32.mrf.mxu1  ;;  %2470 = vmatmul.mubr.bf16.vlgmr.msra.gmra.mxu0 %v491_v9 }
 0x1d5   :  { %v431_v22 = vadd.f32 %v2071_v58, %v430_v16  ;;  %v481_v23 = vmax.f32 %v439_v12, 0.0  ;;  %2518 = vmatpush3.bf16.msra.mxu0 %v2775_v57  ;;  %v3108_v12 = vld [vmem:[%s3410_s6] ss:$0 sm:$0xff] }
 0x1d6   :  { %v2447_v24 = vpop.f32.mrf.mxu1  ;;  %2519 = vmatprep.subr.bf16.mxu0 %v2776_v59 }
 0x1d7   :  { %v479_v26 = vmax.f32 %v431_v22, 0.0  ;;  %v493_v30 = vpack.c.bf16 %v481_v23, %v480_v27  ;;  %v452_v34 = vadd.f32 %v2447_v24, %v2071_v58 }
 0x1d8   :  { %v443_v28 = vpop.f32.mrf.mxu1 }
 0x1d9   :  { %v492_v29 = vpack.c.bf16 %v479_v26, %v478_v25  ;;  %v444_v32 = vadd.f32 %v2071_v58, %v443_v28  ;;  %v484_v41 = vmax.f32 %v452_v34, 0.0  ;;  %2520 = vmatpush3.bf16.msra.mxu0 %v2776_v59 }
 0x1da   :  { %v2448_v31 = vpop.f32.mrf.mxu1 }
 0x1db   :  { %v455_v33 = vadd.f32 %v2448_v31, %v2071_v58  ;;  %2473 = vmatprep.mubr.bf16.mxu0 %v492_v29  ;;  %v482_v39 = vmax.f32 %v444_v32, 0.0 }
 0x1dc   :  { %v446_v35 = vpop.f32.mrf.mxu1  ;;  %2474 = vmatmul.mubr.bf16.gmra.mxu0 %v493_v30  ;;  %v3118_v30 = vld [vmem:[%s3411_s7] ss:$0 sm:$0xff] }
 0x1dd   :  { %v447_v36 = vadd.f32 %v2071_v58, %v446_v35  ;;  %v485_v37 = vmax.f32 %v455_v33, 0.0 }
 0x1de   :  { %v2451_v38 = vpop.f32.mrf.mxu1 }
 0x1df   :  { %v483_v40 = vmax.f32 %v447_v36, 0.0  ;;  %v495_v44 = vpack.c.bf16 %v485_v37, %v484_v41  ;;  %v468_v48 = vadd.f32 %v2451_v38, %v2071_v58 }
 0x1e0   :  { %v459_v42 = vpop.f32.mrf.mxu1 }
 0x1e1   :  { %v494_v43 = vpack.c.bf16 %v483_v40, %v482_v39  ;;  %v460_v46 = vadd.f32 %v2071_v58, %v459_v42  ;;  %v488_v54 = vmax.f32 %v468_v48, 0.0  ;;  %v3129_v42 = vld [vmem:[%s3412_s8] ss:$0 sm:$0xff] }
 0x1e2   :  { %v2452_v45 = vpop.f32.mrf.mxu1 }
 0x1e3   :  { %v471_v47 = vadd.f32 %v2452_v45, %v2071_v58  ;;  %2477 = vmatprep.mubr.bf16.mxu0 %v494_v43  ;;  %v486_v52 = vmax.f32 %v460_v46, 0.0 }
 0x1e4   :  { %v462_v49 = vpop.f32.mrf.mxu1  ;;  %2478 = vmatmul.mubr.bf16.gmra.mxu0 %v495_v44 }
 0x1e5   :  { %v463_v50 = vadd.f32 %v2071_v58, %v462_v49  ;;  %v489_v51 = vmax.f32 %v471_v47, 0.0  ;;  %v2777_v58 = vld [vmem:[%s3407_s3 + $0x68] sm:$0xff]  }
 0x1e6   :  { %2521 = vmatprep.subr.bf16.mxu0 %v2777_v58 }
 0x1e7   :  { %v487_v53 = vmax.f32 %v463_v50, 0.0  ;;  %v497_v56 = vpack.c.bf16 %v489_v51, %v488_v54  ;;  %2522 = vmatpush3.bf16.msra.mxu0 %v2777_v58 }
 0x1e8   :  { %2523 = vmatprep.subr.bf16.mxu0 %v2778_v60 }
 0x1e9   :  { %v496_v55 = vpack.c.bf16 %v487_v53, %v486_v52 }
 0x1eb   :  { %2481 = vmatprep.mubr.bf16.mxu0 %v496_v55  ;;  %2524 = vmatpush3.bf16.msra.mxu0 %v2778_v60 }
 0x1ec   :  { %2482 = vmatmul.mubr.bf16.gmra.mxu0 %v497_v56  ;;  %2525 = vmatprep.subr.bf16.mxu0 %v2779_v61 }
 0x1ef   :  { %2526 = vmatpush3.bf16.msra.mxu0 %v2779_v61 }
 0x1f0   :  { %2527 = vmatprep.subr.bf16.mxu0 %v2780_v62 }
 0x1f3   :  { %2528 = vmatpush3.bf16.msra.mxu0 %v2780_v62 }
 0x294   :  { %v3099_v63 = vpop.f32.mrf.mxu0 }
 0x296   :  { %v3101_v0 = vpop.f32.mrf.mxu0 }
 0x298   :  { %v2472_v1 = vpop.f32.mrf.mxu0 }
 0x29a   :  { %v3103_v2 = vpop.f32.mrf.mxu0 }
 0x29c   :  { %v2475_v3 = vpop.f32.mrf.mxu0 }
 0x29d   :  { %v628_v49 = vadd.f32 %v2475_v3, %v3108_v12 }
 0x29e   :  { %v619_v5 = vpop.f32.mrf.mxu0 }
 0x29f   :  { %v672_v60 = vmax.f32 %v628_v49, 0.0  ;;  %v620_v61 = vadd.f32 %v3108_v12, %v619_v5 }
 0x2a0   :  { %v2476_v6 = vpop.f32.mrf.mxu0 }
 0x2a1   :  { %v631_v43 = vadd.f32 %v2476_v6, %v3108_v12  ;;  %v615_v6 = vadd.f32 %v2472_v1, %v3108_v12  ;;  %v670_v5 = vmax.f32 %v620_v61, 0.0  ;;  %v607_v1 = vadd.f32 %v3108_v12, %v3103_v2 }
 0x2a2   :  { %v622_v7 = vpop.f32.mrf.mxu0 }
 0x2a3   :  { %v673_v55 = vmax.f32 %v631_v43, 0.0  ;;  %v623_v56 = vadd.f32 %v3108_v12, %v622_v7 }
 0x2a4   :  { %v2479_v8 = vpop.f32.mrf.mxu0 }
 0x2a5   :  { %v644_v26 = vadd.f32 %v2479_v8, %v3108_v12  ;;  %v696_v8 = vmul.f32 %v3118_v30, %v673_v55  ;;  %v671_v7 = vmax.f32 %v623_v56, 0.0 }
 0x2a6   :  { %v635_v9 = vpop.f32.mrf.mxu0 }
 0x2a7   :  { %v676_v37 = vmax.f32 %v644_v26, 0.0  ;;  %v636_v38 = vadd.f32 %v3108_v12, %v635_v9 }
 0x2a8   :  { %v2480_v10 = vpop.f32.mrf.mxu0 }
 0x2a9   :  { %v647_v22 = vadd.f32 %v2480_v10, %v3108_v12  ;;  %v699_v50 = vmul.f32 %v3118_v30, %v676_v37  ;;  %v674_v51 = vmax.f32 %v636_v38, 0.0 }
 0x2aa   :  { %v638_v11 = vpop.f32.mrf.mxu0 }
 0x2ab   :  { %v677_v31 = vmax.f32 %v647_v22, 0.0  ;;  %v639_v33 = vadd.f32 %v3108_v12, %v638_v11  ;;  %v722_v62 = vadd.f32 %v3129_v42, %v699_v50  ;;  %v697_v3 = vmul.f32 %v3118_v30, %v674_v51 }
 0x2ac   :  { %v2483_v13 = vpop.f32.mrf.mxu0  ;;  %v612_v11 = vadd.f32 %v3099_v63, %v3108_v12  ;;  %v669_v22 = vmax.f32 %v615_v6, 0.0  ;;  %v604_v63 = vadd.f32 %v3108_v12, %v3101_v0 }
 0x2ad   :  { %v660_v16 = vadd.f32 %v2483_v13, %v3108_v12  ;;  %v700_v44 = vmul.f32 %v3118_v30, %v677_v31  ;;  %v675_v45 = vmax.f32 %v639_v33, 0.0  ;;  %v695_v13 = vmul.f32 %v3118_v30, %v672_v60 }
 0x2ae   :  { %v651_v23 = vpop.f32.mrf.mxu0  ;;  %v668_v26 = vmax.f32 %v612_v11, 0.0  ;;  %v667_v31 = vmax.f32 %v607_v1, 0.0 }
 0x2af   :  { %v680_v24 = vmax.f32 %v660_v16, 0.0  ;;  %v652_v25 = vadd.f32 %v3108_v12, %v651_v23  ;;  %v723_v57 = vadd.f32 %v3129_v42, %v700_v44  ;;  %v698_v59 = vmul.f32 %v3118_v30, %v675_v45 }
 0x2b0   :  { %v2484_v27 = vpop.f32.mrf.mxu0  ;;  %v720_v16 = vadd.f32 %v3129_v42, %v697_v3  ;;  %v719_v23 = vadd.f32 %v3129_v42, %v696_v8  ;;  %v691_v33 = vmul.f32 %v3118_v30, %v668_v26 }
 0x2b1   :  { %v678_v28 = vmax.f32 %v652_v25, 0.0  ;;  %v663_v29 = vadd.f32 %v2484_v27, %v3108_v12  ;;  %v703_v34 = vmul.f32 %v3118_v30, %v680_v24  ;;  %v721_v9 = vadd.f32 %v3129_v42, %v698_v59 }
 0x2b2   :  { %v654_v32 = vpop.f32.mrf.mxu0  ;;  %v733_v10 = vpack.c.bf16 %v723_v57, %v722_v62  ;;  %v694_v24 = vmul.f32 %v3118_v30, %v671_v7  ;;  %v718_v27 = vadd.f32 %v3129_v42, %v695_v13  ;;  %v714_v37 = vadd.f32 %v3129_v42, %v691_v33  ;;  %v2788_v7 = vld [vmem:[%s3409_s5 + $0x50] sm:$0xff]   ;;  %v2108_v13 = vld [vmem:[%s3408_s4 + $0x1] ss:$0 sm:$0xff] }
 0x2b3   :  { %v681_v35 = vmax.f32 %v663_v29, 0.0  ;;  %v655_v36 = vadd.f32 %v3108_v12, %v654_v32  ;;  %v701_v39 = vmul.f32 %v3118_v30, %v678_v28  ;;  %v726_v46 = vadd.f32 %v3129_v42, %v703_v34 }
 0x2b4   :  { %v732_v25 = vpack.c.bf16 %v721_v9, %v720_v16  ;;  %v693_v28 = vmul.f32 %v3118_v30, %v670_v5  ;;  %v692_v29 = vmul.f32 %v3118_v30, %v669_v22  ;;  %v717_v2 = vadd.f32 %v3129_v42, %v694_v24  ;;  %v2789_v9 = vld [vmem:[%s3409_s5 + $0x48] sm:$0xff]  }
 0x2b5   :  { %v704_v40 = vmul.f32 %v3118_v30, %v681_v35  ;;  %v679_v41 = vmax.f32 %v655_v36, 0.0  ;;  %v724_v52 = vadd.f32 %v3129_v42, %v701_v39  ;;  %v731_v32 = vpack.c.bf16 %v719_v23, %v718_v27 }
 0x2b6   :  { %v666_v34 = vmax.f32 %v604_v63, 0.0  ;;  %v716_v35 = vadd.f32 %v3129_v42, %v693_v28  ;;  %v715_v0 = vadd.f32 %v3129_v42, %v692_v29  ;;  %v690_v12 = vmul.f32 %v3118_v30, %v667_v31 }
 0x2b7   :  { %v727_v47 = vadd.f32 %v3129_v42, %v704_v40  ;;  %v702_v48 = vmul.f32 %v3118_v30, %v679_v41 }
 0x2b8   :  { %v730_v36 = vpack.c.bf16 %v717_v2, %v716_v35  ;;  %v689_v38 = vmul.f32 %v3118_v30, %v666_v34  ;;  %v713_v39 = vadd.f32 %v3129_v42, %v690_v12  ;;  %v729_v40 = vpack.c.bf16 %v715_v0, %v714_v37  ;;  %v2781_v30 = vld [vmem:[%s3407_s3 + $0x48] sm:$0xff]  }
 0x2b9   :  { %v725_v53 = vadd.f32 %v3129_v42, %v702_v48  ;;  %v735_v54 = vpack.c.bf16 %v727_v47, %v726_v46  ;;  %2529 = vmatprep.subr.bf16.mxu0 %v2781_v30 }
 0x2ba   :  { %v712_v41 = vadd.f32 %v3129_v42, %v689_v38  ;;  %2530 = vmatpush3.bf16.msra.mxu0 %v2781_v30 }
 0x2bb   :  { %2485 = vmatprep.subr.bf16.mxu1 %v735_v54  ;;  %v734_v58 = vpack.c.bf16 %v725_v53, %v724_v52 }
 0x2bc   :  { %2486 = vmatpush3.bf16.msra.mxu1 %v735_v54  ;;  %v728_v43 = vpack.c.bf16 %v713_v39, %v712_v41 }
 0x2bd   :  { %2487 = vmatprep.subr.bf16.mxu1 %v734_v58 }
 0x2c0   :  { %2488 = vmatpush3.bf16.msra.mxu1 %v734_v58 }
 0x2c1   :  { %2489 = vmatprep.subr.bf16.mxu1 %v733_v10 }
 0x2c4   :  { %2490 = vmatpush3.bf16.msra.mxu1 %v733_v10  ;;  %v2790_v10 = vld [vmem:[%s3409_s5 + $0x40] sm:$0xff]  }
 0x2c5   :  { %2491 = vmatprep.subr.bf16.mxu1 %v732_v25 }
 0x2c8   :  { %2492 = vmatpush3.bf16.msra.mxu1 %v732_v25 }
 0x2c9   :  { %2493 = vmatprep.subr.bf16.mxu1 %v731_v32 }
 0x2cc   :  { %2494 = vmatpush3.bf16.msra.mxu1 %v731_v32 }
 0x2cd   :  { %2495 = vmatprep.subr.bf16.mxu1 %v730_v36 }
 0x2d0   :  { %2496 = vmatpush3.bf16.msra.mxu1 %v730_v36 }
 0x2d1   :  { %2497 = vmatprep.subr.bf16.mxu1 %v729_v40 }
 0x2d4   :  { %2498 = vmatpush3.bf16.msra.mxu1 %v729_v40 }
 0x2d5   :  { %2499 = vmatprep.subr.bf16.mxu1 %v728_v43 }
 0x2d8   :  { %2500 = vmatpush3.bf16.msra.mxu1 %v728_v43 }
 0x2db   :  { %2502 = vmatmul.mubr.bf16.vlgmr.msra.gmra.mxu1 %v3005_v14  ;;  %v2782_v14 = vld [vmem:[%s3407_s3 + $0x40] sm:$0xff]  }
 0x2dc   :  { %2505 = vmatprep.mubr.bf16.mxu1 %v3010_v15  ;;  %2531 = vmatprep.subr.bf16.mxu0 %v2782_v14  ;;  %v2783_v15 = vld [vmem:[%s3409_s5 + $0x78] sm:$0xff]  }
 0x2dd   :  { %2532 = vmatpush3.bf16.msra.mxu0 %v2782_v14  ;;  %2549 = vmatprep.subr.bf16.mxu1 %v2783_v15 }
 0x2de   :  { %2550 = vmatpush3.bf16.msra.mxu1 %v2783_v15 }
 0x2e3   :  { %2506 = vmatmul.mubr.bf16.gmra.mxu1 %v3020_v17  ;;  %v2784_v17 = vld [vmem:[%s3409_s5 + $0x70] sm:$0xff]  }
 0x2e4   :  { %2509 = vmatprep.mubr.bf16.mxu1 %v3025_v18  ;;  %2551 = vmatprep.subr.bf16.mxu1 %v2784_v17  ;;  %v2785_v18 = vld [vmem:[%s3409_s5 + $0x68] sm:$0xff]  }
 0x2e5   :  { %2552 = vmatpush3.bf16.msra.mxu1 %v2784_v17 }
 0x2e6   :  { %2553 = vmatprep.subr.bf16.mxu1 %v2785_v18 }
 0x2e9   :  { %2554 = vmatpush3.bf16.msra.mxu1 %v2785_v18 }
 0x2eb   :  { %2510 = vmatmul.mubr.bf16.gmra.mxu1 %v3032_v19  ;;  %v2786_v19 = vld [vmem:[%s3409_s5 + $0x60] sm:$0xff]  }
 0x2ec   :  { %2513 = vmatprep.mubr.bf16.mxu1 %v3037_v20  ;;  %2555 = vmatprep.subr.bf16.mxu1 %v2786_v19  ;;  %v2787_v20 = vld [vmem:[%s3409_s5 + $0x58] sm:$0xff]  }
 0x2ed   :  { %2556 = vmatpush3.bf16.msra.mxu1 %v2786_v19 }
 0x2ee   :  { %2557 = vmatprep.subr.bf16.mxu1 %v2787_v20 }
 0x2f1   :  { %2558 = vmatpush3.bf16.msra.mxu1 %v2787_v20 }
 0x2f2   :  { %2559 = vmatprep.subr.bf16.mxu1 %v2788_v7 }
 0x2f3   :  { %2514 = vmatmul.mubr.bf16.gmra.mxu1 %v3044_v21 }
 0x2f5   :  { %2560 = vmatpush3.bf16.msra.mxu1 %v2788_v7  ;;  %v2795_v7 = vld [vmem:[%s3407_s3 + $0x98] sm:$0xff]  }
 0x2f6   :  { %2561 = vmatprep.subr.bf16.mxu1 %v2789_v9 }
 0x2f9   :  { %2562 = vmatpush3.bf16.msra.mxu1 %v2789_v9  ;;  %v2796_v9 = vld [vmem:[%s3407_s3 + $0x90] sm:$0xff]  }
 0x2fa   :  { %2563 = vmatprep.subr.bf16.mxu1 %v2790_v10 }
 0x2fd   :  { %2564 = vmatpush3.bf16.msra.mxu1 %v2790_v10 }
 0x39b   :  { %v2503_v21 = vpop.f32.mrf.mxu1 }
 0x39d   :  { %v770_v42 = vpop.f32.mrf.mxu1 }
 0x39f   :  { %v2504_v44 = vpop.f32.mrf.mxu1 }
 0x3a0   :  { %v834_v47 = vpack.c.bf16 %v2504_v44, %v2503_v21 }
 0x3a1   :  { %v773_v45 = vpop.f32.mrf.mxu1 }
 0x3a2   :  { %v833_v46 = vpack.c.bf16 %v773_v45, %v770_v42 }
 0x3a3   :  { %v2507_v48 = vpop.f32.mrf.mxu1 }
 0x3a4   :  { %2533 = vmatprep.mubr.bf16.mxu0 %v833_v46 }
 0x3a5   :  { %v786_v49 = vpop.f32.mrf.mxu1  ;;  %2534 = vmatmul.mubr.bf16.vlgmr.msra.gmra.mxu0 %v834_v47 }
 0x3a7   :  { %v2508_v50 = vpop.f32.mrf.mxu1 }
 0x3a8   :  { %v836_v53 = vpack.c.bf16 %v2508_v50, %v2507_v48 }
 0x3a9   :  { %v789_v51 = vpop.f32.mrf.mxu1 }
 0x3aa   :  { %v835_v52 = vpack.c.bf16 %v789_v51, %v786_v49 }
 0x3ab   :  { %v2511_v54 = vpop.f32.mrf.mxu1 }
 0x3ac   :  { %2537 = vmatprep.mubr.bf16.mxu0 %v835_v52 }
 0x3ad   :  { %v802_v55 = vpop.f32.mrf.mxu1  ;;  %2538 = vmatmul.mubr.bf16.gmra.mxu0 %v836_v53 }
 0x3af   :  { %v2512_v56 = vpop.f32.mrf.mxu1 }
 0x3b0   :  { %v838_v58 = vpack.c.bf16 %v2512_v56, %v2511_v54 }
 0x3b1   :  { %v805_v57 = vpop.f32.mrf.mxu1 }
 0x3b2   :  { %v837_v59 = vpack.c.bf16 %v805_v57, %v802_v55 }
 0x3b3   :  { %v2515_v60 = vpop.f32.mrf.mxu1 }
 0x3b4   :  { %2541 = vmatprep.mubr.bf16.mxu0 %v837_v59 }
 0x3b5   :  { %v818_v61 = vpop.f32.mrf.mxu1  ;;  %2542 = vmatmul.mubr.bf16.gmra.mxu0 %v838_v58 }
 0x3b7   :  { %v2516_v62 = vpop.f32.mrf.mxu1 }
 0x3b8   :  { %v840_v8 = vpack.c.bf16 %v2516_v62, %v2515_v60  ;;  %v2791_v62 = vld [vmem:[%s3407_s3 + $0xb8] sm:$0xff]  }
 0x3b9   :  { %v821_v3 = vpop.f32.mrf.mxu1  ;;  %2613 = vmatprep.subr.bf16.mxu1 %v2791_v62 }
 0x3ba   :  { %v839_v6 = vpack.c.bf16 %v821_v3, %v818_v61  ;;  %v2792_v3 = vld [vmem:[%s3407_s3 + $0xb0] sm:$0xff]  }
 0x3bc   :  { %2545 = vmatprep.mubr.bf16.mxu0 %v839_v6  ;;  %v2793_v6 = vld [vmem:[%s3407_s3 + $0xa8] sm:$0xff]  }
 0x3bd   :  { %2546 = vmatmul.mubr.bf16.gmra.mxu0 %v840_v8  ;;  %v2794_v8 = vld [vmem:[%s3407_s3 + $0xa0] sm:$0xff]  }
 0x3be   :  { %2597 = vmatprep.mubr.bf16.mxu0 %v2972_v4 }
 0x465   :  { %v2535_v11 = vpop.f32.mrf.mxu0 }
 0x466   :  { %v957_v1 = vadd.f32 %v2535_v11, %v2108_v13 }
 0x467   :  { %v948_v4 = vpop.f32.mrf.mxu0 }
 0x468   :  { %v949_v16 = vadd.f32 %v2108_v13, %v948_v4  ;;  %v1013_v28 = vmax.f32 %v957_v1, 0.0 }
 0x469   :  { %v2536_v5 = vpop.f32.mrf.mxu0 }
 0x46a   :  { %v960_v22 = vadd.f32 %v2536_v5, %v2108_v13  ;;  %v1011_v63 = vmax.f32 %v949_v16, 0.0 }
 0x46b   :  { %v951_v23 = vpop.f32.mrf.mxu0 }
 0x46c   :  { %v952_v24 = vadd.f32 %v2108_v13, %v951_v23  ;;  %v1014_v25 = vmax.f32 %v960_v22, 0.0 }
 0x46d   :  { %v2539_v26 = vpop.f32.mrf.mxu0 }
 0x46e   :  { %v1012_v27 = vmax.f32 %v952_v24, 0.0  ;;  %v1028_v2 = vpack.c.bf16 %v1014_v25, %v1013_v28  ;;  %v973_v35 = vadd.f32 %v2539_v26, %v2108_v13 }
 0x46f   :  { %v964_v29 = vpop.f32.mrf.mxu0 }
 0x470   :  { %v1027_v31 = vpack.c.bf16 %v1012_v27, %v1011_v63  ;;  %v965_v33 = vadd.f32 %v2108_v13, %v964_v29  ;;  %v1017_v40 = vmax.f32 %v973_v35, 0.0  ;;  %v3239_v63 = vld [vmem:[%s3410_s6 + $0x1] ss:$0 sm:$0xff] }
 0x471   :  { %v2540_v32 = vpop.f32.mrf.mxu0 }
 0x472   :  { %v976_v34 = vadd.f32 %v2540_v32, %v2108_v13  ;;  %2565 = vmatprep.mubr.bf16.mxu1 %v1027_v31  ;;  %v1015_v38 = vmax.f32 %v965_v33, 0.0 }
 0x473   :  { %v967_v0 = vpop.f32.mrf.mxu0  ;;  %2566 = vmatmul.mubr.bf16.vlgmr.msra.gmra.mxu1 %v1028_v2 }
 0x474   :  { %v968_v12 = vadd.f32 %v2108_v13, %v967_v0  ;;  %v1018_v36 = vmax.f32 %v976_v34, 0.0  ;;  %2614 = vmatpush3.bf16.msra.mxu1 %v2791_v62 }
 0x475   :  { %v2543_v37 = vpop.f32.mrf.mxu0  ;;  %2615 = vmatprep.subr.bf16.mxu1 %v2792_v3 }
 0x476   :  { %v1016_v39 = vmax.f32 %v968_v12, 0.0  ;;  %v1030_v30 = vpack.c.bf16 %v1018_v36, %v1017_v40  ;;  %v989_v18 = vadd.f32 %v2543_v37, %v2108_v13  ;;  %v3249_v12 = vld [vmem:[%s3411_s7 + $0x1] ss:$0 sm:$0xff] }
 0x477   :  { %v980_v41 = vpop.f32.mrf.mxu0 }
 0x478   :  { %v1029_v43 = vpack.c.bf16 %v1016_v39, %v1015_v38  ;;  %v981_v15 = vadd.f32 %v2108_v13, %v980_v41  ;;  %v1021_v46 = vmax.f32 %v989_v18, 0.0  ;;  %2616 = vmatpush3.bf16.msra.mxu1 %v2792_v3  ;;  %v3260_v18 = vld [vmem:[%s3412_s8 + $0x1] ss:$0 sm:$0xff] }
 0x479   :  { %v2544_v14 = vpop.f32.mrf.mxu0  ;;  %2617 = vmatprep.subr.bf16.mxu1 %v2793_v6 }
 0x47a   :  { %v992_v17 = vadd.f32 %v2544_v14, %v2108_v13  ;;  %2569 = vmatprep.mubr.bf16.mxu1 %v1029_v43  ;;  %v1019_v44 = vmax.f32 %v981_v15, 0.0 }
 0x47b   :  { %v983_v19 = vpop.f32.mrf.mxu0  ;;  %2570 = vmatmul.mubr.bf16.gmra.mxu1 %v1030_v30 }
 0x47c   :  { %v984_v20 = vadd.f32 %v2108_v13, %v983_v19  ;;  %v1022_v21 = vmax.f32 %v992_v17, 0.0  ;;  %2618 = vmatpush3.bf16.msra.mxu1 %v2793_v6 }
 0x47d   :  { %v2547_v42 = vpop.f32.mrf.mxu0  ;;  %2619 = vmatprep.subr.bf16.mxu1 %v2794_v8 }
 0x47e   :  { %v1020_v45 = vmax.f32 %v984_v20, 0.0  ;;  %v1032_v49 = vpack.c.bf16 %v1022_v21, %v1021_v46  ;;  %v1005_v53 = vadd.f32 %v2547_v42, %v2108_v13 }
 0x47f   :  { %v996_v47 = vpop.f32.mrf.mxu0 }
 0x480   :  { %v1031_v48 = vpack.c.bf16 %v1020_v45, %v1019_v44  ;;  %v997_v51 = vadd.f32 %v2108_v13, %v996_v47  ;;  %v1025_v58 = vmax.f32 %v1005_v53, 0.0  ;;  %2620 = vmatpush3.bf16.msra.mxu1 %v2794_v8 }
 0x481   :  { %v2548_v50 = vpop.f32.mrf.mxu0  ;;  %2621 = vmatprep.subr.bf16.mxu1 %v2795_v7 }
 0x482   :  { %v1008_v52 = vadd.f32 %v2548_v50, %v2108_v13  ;;  %2573 = vmatprep.mubr.bf16.mxu1 %v1031_v48  ;;  %v1023_v57 = vmax.f32 %v997_v51, 0.0 }
 0x483   :  { %v999_v54 = vpop.f32.mrf.mxu0  ;;  %2574 = vmatmul.mubr.bf16.gmra.mxu1 %v1032_v49 }
 0x484   :  { %v1000_v55 = vadd.f32 %v2108_v13, %v999_v54  ;;  %v1026_v56 = vmax.f32 %v1008_v52, 0.0  ;;  %2622 = vmatpush3.bf16.msra.mxu1 %v2795_v7 }
 0x485   :  { %2623 = vmatprep.subr.bf16.mxu1 %v2796_v9 }
 0x486   :  { %v1024_v59 = vmax.f32 %v1000_v55, 0.0  ;;  %v1034_v61 = vpack.c.bf16 %v1026_v56, %v1025_v58 }
 0x488   :  { %v1033_v60 = vpack.c.bf16 %v1024_v59, %v1023_v57  ;;  %2624 = vmatpush3.bf16.msra.mxu1 %v2796_v9 }
 0x48a   :  { %2577 = vmatprep.mubr.bf16.mxu1 %v1033_v60 }
 0x48b   :  { %2578 = vmatmul.mubr.bf16.gmra.mxu1 %v1034_v61 }
 0x533   :  { %v3230_v10 = vpop.f32.mrf.mxu1 }
 0x534   :  { %v1151_v7 = vadd.f32 %v3230_v10, %v3239_v63 }
 0x535   :  { %v3232_v11 = vpop.f32.mrf.mxu1 }
 0x536   :  { %v1143_v10 = vadd.f32 %v3239_v63, %v3232_v11 }
 0x537   :  { %v2568_v4 = vpop.f32.mrf.mxu1 }
 0x538   :  { %v1154_v61 = vadd.f32 %v2568_v4, %v3239_v63 }
 0x539   :  { %v3234_v13 = vpop.f32.mrf.mxu1 }
 0x53a   :  { %v1146_v4 = vadd.f32 %v3239_v63, %v3234_v13 }
 0x53b   :  { %v2571_v5 = vpop.f32.mrf.mxu1 }
 0x53c   :  { %v1167_v46 = vadd.f32 %v2571_v5, %v3239_v63 }
 0x53d   :  { %v1158_v16 = vpop.f32.mrf.mxu1 }
 0x53e   :  { %v1211_v57 = vmax.f32 %v1167_v46, 0.0  ;;  %v1159_v59 = vadd.f32 %v3239_v63, %v1158_v16 }
 0x53f   :  { %v2572_v22 = vpop.f32.mrf.mxu1 }
 0x540   :  { %v1170_v19 = vadd.f32 %v2572_v22, %v3239_v63  ;;  %v1235_v9 = vmul.f32 %v3249_v12, %v1211_v57  ;;  %v1209_v5 = vmax.f32 %v1159_v59, 0.0  ;;  %v1208_v22 = vmax.f32 %v1154_v61, 0.0 }
 0x541   :  { %v1161_v1 = vpop.f32.mrf.mxu1 }
 0x542   :  { %v1212_v52 = vmax.f32 %v1170_v19, 0.0  ;;  %v1162_v53 = vadd.f32 %v3239_v63, %v1161_v1  ;;  %v2799_v19 = vld [vmem:[%s3409_s5 + $0xb8] sm:$0xff]  }
 0x543   :  { %v2575_v23 = vpop.f32.mrf.mxu1 }
 0x544   :  { %v1183_v33 = vadd.f32 %v2575_v23, %v3239_v63  ;;  %v1236_v62 = vmul.f32 %v3249_v12, %v1212_v52  ;;  %v1210_v3 = vmax.f32 %v1162_v53, 0.0 }
 0x545   :  { %v1174_v24 = vpop.f32.mrf.mxu1 }
 0x546   :  { %v1215_v43 = vmax.f32 %v1183_v33, 0.0  ;;  %v1175_v30 = vadd.f32 %v3239_v63, %v1174_v24  ;;  %v1260_v1 = vadd.f32 %v3260_v18, %v1236_v62  ;;  %v1234_v23 = vmul.f32 %v3249_v12, %v1210_v3 }
 0x547   :  { %v2576_v25 = vpop.f32.mrf.mxu1 }
 0x548   :  { %v1186_v29 = vadd.f32 %v2576_v25, %v3239_v63  ;;  %v1239_v47 = vmul.f32 %v3249_v12, %v1215_v43  ;;  %v1213_v48 = vmax.f32 %v1175_v30, 0.0  ;;  %v1207_v25 = vmax.f32 %v1151_v7, 0.0  ;;  %v2827_v43 = vld [vmem:[%s3405_s1 + $0x20] sm:$0xff]   ;;  %v2828_v30 = vld [vmem:[%s3405_s1 + $0x28] sm:$0xff]  }
 0x549   :  { %v1177_v26 = vpop.f32.mrf.mxu1  ;;  %v1258_v13 = vadd.f32 %v3260_v18, %v1234_v23 }
 0x54a   :  { %v1216_v36 = vmax.f32 %v1186_v29, 0.0  ;;  %v1178_v38 = vadd.f32 %v3239_v63, %v1177_v26  ;;  %v1263_v58 = vadd.f32 %v3260_v18, %v1239_v47  ;;  %v1237_v60 = vmul.f32 %v3249_v12, %v1213_v48 }
 0x54b   :  { %v2579_v27 = vpop.f32.mrf.mxu1  ;;  %v1259_v26 = vadd.f32 %v3260_v18, %v1235_v9  ;;  %v1206_v29 = vmax.f32 %v1146_v4, 0.0  ;;  %v2806_v4 = vld [vmem:[%s3409_s5 + $0x80] sm:$0xff]  }
 0x54c   :  { %v1199_v28 = vadd.f32 %v2579_v27, %v3239_v63  ;;  %v1240_v20 = vmul.f32 %v3249_v12, %v1216_v36  ;;  %v1214_v21 = vmax.f32 %v1178_v38, 0.0  ;;  %v1261_v16 = vadd.f32 %v3260_v18, %v1237_v60 }
 0x54d   :  { %v1190_v31 = vpop.f32.mrf.mxu1  ;;  %v1233_v27 = vmul.f32 %v3249_v12, %v1209_v5 }
 0x54e   :  { %v1219_v2 = vmax.f32 %v1199_v28, 0.0  ;;  %v1191_v32 = vadd.f32 %v3239_v63, %v1190_v31  ;;  %v1264_v54 = vadd.f32 %v3260_v18, %v1240_v20  ;;  %v1238_v55 = vmul.f32 %v3249_v12, %v1214_v21  ;;  %v2800_v20 = vld [vmem:[%s3409_s5 + $0xb0] sm:$0xff]   ;;  %v2801_v21 = vld [vmem:[%s3409_s5 + $0xa8] sm:$0xff]  }
 0x54f   :  { %v2580_v34 = vpop.f32.mrf.mxu1  ;;  %v1232_v28 = vmul.f32 %v3249_v12, %v1208_v22  ;;  %v1272_v31 = vpack.c.bf16 %v1260_v1, %v1259_v26  ;;  %v1257_v33 = vadd.f32 %v3260_v18, %v1233_v27  ;;  %v2805_v22 = vld [vmem:[%s3409_s5 + $0x88] sm:$0xff]  }
 0x550   :  { %v1217_v35 = vmax.f32 %v1191_v32, 0.0  ;;  %v1202_v0 = vadd.f32 %v2580_v34, %v3239_v63  ;;  %v1243_v39 = vmul.f32 %v3249_v12, %v1219_v2  ;;  %v1262_v6 = vadd.f32 %v3260_v18, %v1238_v55 }
 0x551   :  { %v1193_v37 = vpop.f32.mrf.mxu1  ;;  %v1274_v8 = vpack.c.bf16 %v1264_v54, %v1263_v58  ;;  %v1231_v2 = vmul.f32 %v3249_v12, %v1207_v25  ;;  %v1205_v32 = vmax.f32 %v1143_v10, 0.0  ;;  %v1256_v11 = vadd.f32 %v3260_v18, %v1232_v28 }
 0x552   :  { %v1220_v40 = vmax.f32 %v1202_v0, 0.0  ;;  %v1194_v41 = vadd.f32 %v3239_v63, %v1193_v37  ;;  %v1241_v14 = vmul.f32 %v3249_v12, %v1217_v35  ;;  %v1267_v42 = vadd.f32 %v3260_v18, %v1243_v39 }
 0x553   :  { %v1273_v24 = vpack.c.bf16 %v1262_v6, %v1261_v16  ;;  %v1230_v63 = vmul.f32 %v3249_v12, %v1206_v29  ;;  %v1271_v34 = vpack.c.bf16 %v1258_v13, %v1257_v33  ;;  %v1255_v35 = vadd.f32 %v3260_v18, %v1231_v2  ;;  %v2804_v16 = vld [vmem:[%s3409_s5 + $0x90] sm:$0xff]  }
 0x554   :  { %v1244_v15 = vmul.f32 %v3249_v12, %v1220_v40  ;;  %v1218_v17 = vmax.f32 %v1194_v41, 0.0  ;;  %v1265_v49 = vadd.f32 %v3260_v18, %v1241_v14  ;;  %v1229_v0 = vmul.f32 %v3249_v12, %v1205_v32  ;;  %v2824_v40 = vld [vmem:[%s3405_s1 + $0x8] sm:$0xff]   ;;  %v2826_v41 = vld [vmem:[%s3405_s1 + $0x18] sm:$0xff]   ;;  %v2829_v14 = vld [vmem:[%s3405_s1 + $0x30] sm:$0xff]  }
 0x555   :  { %v1254_v36 = vadd.f32 %v3260_v18, %v1230_v63  ;;  %v1270_v37 = vpack.c.bf16 %v1256_v11, %v1255_v35 }
 0x556   :  { %v1268_v44 = vadd.f32 %v3260_v18, %v1244_v15  ;;  %v1242_v45 = vmul.f32 %v3249_v12, %v1218_v17  ;;  %v1253_v38 = vadd.f32 %v3260_v18, %v1229_v0  ;;  %v2825_v12 = vld [vmem:[%s3405_s1 + $0x10] sm:$0xff]   ;;  %v2830_v15 = vld [vmem:[%s3405_s1 + $0x38] sm:$0xff]   ;;  %v2797_v17 = vld [vmem:[%s3407_s3 + $0x88] sm:$0xff]  }
 0x557   :  { %2625 = vmatprep.subr.bf16.mxu1 %v2797_v17 }
 0x558   :  { %v1266_v50 = vadd.f32 %v3260_v18, %v1242_v45  ;;  %v1276_v51 = vpack.c.bf16 %v1268_v44, %v1267_v42  ;;  %v1269_v39 = vpack.c.bf16 %v1254_v36, %v1253_v38  ;;  %2626 = vmatpush3.bf16.msra.mxu1 %v2797_v17  ;;  %v2798_v18 = vld [vmem:[%s3407_s3 + $0x80] sm:$0xff]   ;;  %v2803_v44 = vld [vmem:[%s3409_s5 + $0x98] sm:$0xff]  }
 0x559   :  { %2627 = vmatprep.subr.bf16.mxu1 %v2798_v18  ;;  %v2802_v42 = vld [vmem:[%s3409_s5 + $0xa0] sm:$0xff]  }
 0x55a   :  { %2581 = vmatprep.subr.bf16.mxu0 %v1276_v51  ;;  %v1275_v56 = vpack.c.bf16 %v1266_v50, %v1265_v49 }
 0x55b   :  { %2582 = vmatpush3.bf16.msra.mxu0 %v1276_v51 }
 0x55c   :  { %2583 = vmatprep.subr.bf16.mxu0 %v1275_v56  ;;  %2628 = vmatpush3.bf16.msra.mxu1 %v2798_v18 }
 0x55f   :  { %2584 = vmatpush3.bf16.msra.mxu0 %v1275_v56 }
 0x560   :  { %2585 = vmatprep.subr.bf16.mxu0 %v1274_v8 }
 0x563   :  { %2586 = vmatpush3.bf16.msra.mxu0 %v1274_v8 }
 0x564   :  { %2587 = vmatprep.subr.bf16.mxu0 %v1273_v24 }
 0x567   :  { %2588 = vmatpush3.bf16.msra.mxu0 %v1273_v24  ;;  %v2164_v24 = vld [vmem:[%s3408_s4 + $0x2] ss:$0 sm:$0xff] }
 0x568   :  { %2589 = vmatprep.subr.bf16.mxu0 %v1272_v31 }
 0x56b   :  { %2590 = vmatpush3.bf16.msra.mxu0 %v1272_v31 }
 0x56c   :  { %2591 = vmatprep.subr.bf16.mxu0 %v1271_v34 }
 0x56f   :  { %2592 = vmatpush3.bf16.msra.mxu0 %v1271_v34 }
 0x570   :  { %2593 = vmatprep.subr.bf16.mxu0 %v1270_v37 }
 0x573   :  { %2594 = vmatpush3.bf16.msra.mxu0 %v1270_v37 }
 0x574   :  { %2595 = vmatprep.subr.bf16.mxu0 %v1269_v39 }
 0x577   :  { %2596 = vmatpush3.bf16.msra.mxu0 %v1269_v39 }
 0x578   :  { %2645 = vmatprep.subr.bf16.mxu0 %v2799_v19 }
 0x57a   :  { %2598 = vmatmul.mubr.bf16.vlgmr.msra.gmra.mxu0 %v2824_v40 }
 0x57b   :  { %2601 = vmatprep.mubr.bf16.mxu0 %v2825_v12  ;;  %2646 = vmatpush3.bf16.msra.mxu0 %v2799_v19 }
 0x57c   :  { %2647 = vmatprep.subr.bf16.mxu0 %v2800_v20 }
 0x57f   :  { %2648 = vmatpush3.bf16.msra.mxu0 %v2800_v20 }
 0x580   :  { %2649 = vmatprep.subr.bf16.mxu0 %v2801_v21 }
 0x582   :  { %2602 = vmatmul.mubr.bf16.gmra.mxu0 %v2826_v41 }
 0x583   :  { %2605 = vmatprep.mubr.bf16.mxu0 %v2827_v43  ;;  %2650 = vmatpush3.bf16.msra.mxu0 %v2801_v21 }
 0x584   :  { %2651 = vmatprep.subr.bf16.mxu0 %v2802_v42 }
 0x587   :  { %2652 = vmatpush3.bf16.msra.mxu0 %v2802_v42 }
 0x588   :  { %2653 = vmatprep.subr.bf16.mxu0 %v2803_v44 }
 0x58a   :  { %2606 = vmatmul.mubr.bf16.gmra.mxu0 %v2828_v30 }
 0x58b   :  { %2609 = vmatprep.mubr.bf16.mxu0 %v2829_v14  ;;  %2654 = vmatpush3.bf16.msra.mxu0 %v2803_v44 }
 0x58c   :  { %2655 = vmatprep.subr.bf16.mxu0 %v2804_v16 }
 0x58f   :  { %2656 = vmatpush3.bf16.msra.mxu0 %v2804_v16  ;;  %v2811_v16 = vld [vmem:[#allocation2 + $0x20] sm:$0xff]  }
 0x590   :  { %2657 = vmatprep.subr.bf16.mxu0 %v2805_v22 }
 0x592   :  { %2610 = vmatmul.mubr.bf16.gmra.mxu0 %v2830_v15 }
 0x593   :  { %2658 = vmatpush3.bf16.msra.mxu0 %v2805_v22  ;;  %v2812_v22 = vld [vmem:[#allocation2 + $0x18] sm:$0xff]  }
 0x594   :  { %2659 = vmatprep.subr.bf16.mxu0 %v2806_v4 }
 0x597   :  { %2660 = vmatpush3.bf16.msra.mxu0 %v2806_v4  ;;  %v2813_v4 = vld [vmem:[#allocation2 + $0x10] sm:$0xff]  }
 0x63a   :  { %v2599_v45 = vpop.f32.mrf.mxu0 }
 0x63c   :  { %v1311_v46 = vpop.f32.mrf.mxu0 }
 0x63e   :  { %v2600_v47 = vpop.f32.mrf.mxu0 }
 0x63f   :  { %v1375_v50 = vpack.c.bf16 %v2600_v47, %v2599_v45 }
 0x640   :  { %v1314_v48 = vpop.f32.mrf.mxu0 }
 0x641   :  { %v1374_v49 = vpack.c.bf16 %v1314_v48, %v1311_v46 }
 0x642   :  { %v2603_v51 = vpop.f32.mrf.mxu0 }
 0x643   :  { %2629 = vmatprep.mubr.bf16.mxu1 %v1374_v49 }
 0x644   :  { %v1327_v52 = vpop.f32.mrf.mxu0  ;;  %2630 = vmatmul.mubr.bf16.vlgmr.msra.gmra.mxu1 %v1375_v50 }
 0x646   :  { %v2604_v53 = vpop.f32.mrf.mxu0 }
 0x647   :  { %v1377_v56 = vpack.c.bf16 %v2604_v53, %v2603_v51 }
 0x648   :  { %v1330_v54 = vpop.f32.mrf.mxu0 }
 0x649   :  { %v1376_v55 = vpack.c.bf16 %v1330_v54, %v1327_v52 }
 0x64a   :  { %v2607_v57 = vpop.f32.mrf.mxu0 }
 0x64b   :  { %2633 = vmatprep.mubr.bf16.mxu1 %v1376_v55 }
 0x64c   :  { %v1343_v59 = vpop.f32.mrf.mxu0  ;;  %2634 = vmatmul.mubr.bf16.gmra.mxu1 %v1377_v56 }
 0x64e   :  { %v2608_v58 = vpop.f32.mrf.mxu0 }
 0x64f   :  { %v1379_v62 = vpack.c.bf16 %v2608_v58, %v2607_v57 }
 0x650   :  { %v1346_v60 = vpop.f32.mrf.mxu0 }
 0x651   :  { %v1378_v61 = vpack.c.bf16 %v1346_v60, %v1343_v59 }
 0x652   :  { %v2611_v3 = vpop.f32.mrf.mxu0 }
 0x653   :  { %2637 = vmatprep.mubr.bf16.mxu1 %v1378_v61 }
 0x654   :  { %v1359_v6 = vpop.f32.mrf.mxu0  ;;  %2638 = vmatmul.mubr.bf16.gmra.mxu1 %v1379_v62 }
 0x656   :  { %v2612_v8 = vpop.f32.mrf.mxu0 }
 0x657   :  { %v1381_v5 = vpack.c.bf16 %v2612_v8, %v2611_v3  ;;  %v2879_v8 = vmov 0.0  }
 0x658   :  { %v1362_v7 = vpop.f32.mrf.mxu0  ;;  %2677 = vmatprep.subr.bf16.mxu1 %v2879_v8  ;;  %2697 = vmatprep.subr.bf16.mxu0 %v2879_v8 }
 0x659   :  { %v1380_v9 = vpack.c.bf16 %v1362_v7, %v1359_v6  ;;  %v2808_v7 = vld [vmem:[#allocation2 + $0x38] sm:$0xff]  }
 0x65b   :  { %2641 = vmatprep.mubr.bf16.mxu1 %v1380_v9  ;;  %v2809_v9 = vld [vmem:[#allocation2 + $0x30] sm:$0xff]  }
 0x65c   :  { %2642 = vmatmul.mubr.bf16.gmra.mxu1 %v1381_v5  ;;  %v2810_v5 = vld [vmem:[#allocation2 + $0x28] sm:$0xff]  }
 0x65d   :  { %2693 = vmatprep.mubr.msk.bf16.mxu1 %vm2880_vm0, %v2879_v8 }
 0x704   :  { %v2631_v1 = vpop.f32.mrf.mxu1 }
 0x705   :  { %v1498_v27 = vadd.f32 %v2631_v1, %v2164_v24 }
 0x706   :  { %v1489_v23 = vpop.f32.mrf.mxu1 }
 0x707   :  { %v1490_v10 = vadd.f32 %v2164_v24, %v1489_v23  ;;  %v1554_v33 = vmax.f32 %v1498_v27, 0.0 }
 0x708   :  { %v2632_v25 = vpop.f32.mrf.mxu1 }
 0x709   :  { %v1501_v26 = vadd.f32 %v2632_v25, %v2164_v24  ;;  %v1552_v2 = vmax.f32 %v1490_v10, 0.0 }
 0x70a   :  { %v1492_v28 = vpop.f32.mrf.mxu1 }
 0x70b   :  { %v1493_v29 = vadd.f32 %v2164_v24, %v1492_v28  ;;  %v1555_v13 = vmax.f32 %v1501_v26, 0.0 }
 0x70c   :  { %v2635_v31 = vpop.f32.mrf.mxu1 }
 0x70d   :  { %v1553_v32 = vmax.f32 %v1493_v29, 0.0  ;;  %v1569_v34 = vpack.c.bf16 %v1555_v13, %v1554_v33  ;;  %v1514_v37 = vadd.f32 %v2635_v31, %v2164_v24  ;;  %v2190_v33 = vld [vmem:[%s3410_s6 + $0x2] ss:$0 sm:$0xff] }
 0x70e   :  { %v1505_v11 = vpop.f32.mrf.mxu1 }
 0x70f   :  { %v1568_v63 = vpack.c.bf16 %v1553_v32, %v1552_v2  ;;  %v1506_v0 = vadd.f32 %v2164_v24, %v1505_v11  ;;  %v1558_v30 = vmax.f32 %v1514_v37, 0.0 }
 0x710   :  { %v2636_v35 = vpop.f32.mrf.mxu1 }
 0x711   :  { %v1517_v36 = vadd.f32 %v2636_v35, %v2164_v24  ;;  %2661 = vmatprep.mubr.bf16.mxu0 %v1568_v63  ;;  %v1556_v41 = vmax.f32 %v1506_v0, 0.0 }
 0x712   :  { %v1508_v38 = vpop.f32.mrf.mxu1  ;;  %2662 = vmatmul.mubr.bf16.vlgmr.msra.gmra.mxu0 %v1569_v34 }
 0x713   :  { %v1509_v39 = vadd.f32 %v2164_v24, %v1508_v38  ;;  %v1559_v40 = vmax.f32 %v1517_v36, 0.0  ;;  %2698 = vmatpush3.bf16.msra.mxu0 %v2808_v7  ;;  %v2807_v7 = vld [vmem:[%s3406_s2] sm:$0xff]  }
 0x714   :  { %v2639_v12 = vpop.f32.mrf.mxu1  ;;  %2699 = vmatprep.subr.bf16.mxu0 %v2879_v8 }
 0x715   :  { %v1557_v43 = vmax.f32 %v1509_v39, 0.0  ;;  %v1571_v17 = vpack.c.bf16 %v1559_v40, %v1558_v30  ;;  %v1530_v21 = vadd.f32 %v2639_v12, %v2164_v24 }
 0x716   :  { %v1521_v14 = vpop.f32.mrf.mxu1 }
 0x717   :  { %v1570_v15 = vpack.c.bf16 %v1557_v43, %v1556_v41  ;;  %v1522_v19 = vadd.f32 %v2164_v24, %v1521_v14  ;;  %v1562_v49 = vmax.f32 %v1530_v21, 0.0  ;;  %2700 = vmatpush3.bf16.msra.mxu0 %v2809_v9  ;;  %v2814_v9 = vld [vmem:[#allocation2 + $0x8] sm:$0xff]  }
 0x718   :  { %v2640_v18 = vpop.f32.mrf.mxu1  ;;  %2701 = vmatprep.subr.bf16.mxu0 %v2879_v8 }
 0x719   :  { %v1533_v20 = vadd.f32 %v2640_v18, %v2164_v24  ;;  %2665 = vmatprep.mubr.bf16.mxu0 %v1570_v15  ;;  %v1560_v47 = vmax.f32 %v1522_v19, 0.0 }
 0x71a   :  { %v1524_v42 = vpop.f32.mrf.mxu1  ;;  %2666 = vmatmul.mubr.bf16.gmra.mxu0 %v1571_v17 }
 0x71b   :  { %v1525_v44 = vadd.f32 %v2164_v24, %v1524_v42  ;;  %v1563_v45 = vmax.f32 %v1533_v20, 0.0  ;;  %2702 = vmatpush3.bf16.msra.mxu0 %v2810_v5  ;;  %v2815_v5 = vld [vmem:[#allocation2] sm:$0xff]  }
 0x71c   :  { %v2643_v46 = vpop.f32.mrf.mxu1  ;;  %2703 = vmatprep.subr.bf16.mxu0 %v2879_v8 }
 0x71d   :  { %v1561_v48 = vmax.f32 %v1525_v44, 0.0  ;;  %v1573_v52 = vpack.c.bf16 %v1563_v45, %v1562_v49  ;;  %v1546_v56 = vadd.f32 %v2643_v46, %v2164_v24 }
 0x71e   :  { %v1537_v50 = vpop.f32.mrf.mxu1 }
 0x71f   :  { %v1572_v51 = vpack.c.bf16 %v1561_v48, %v1560_v47  ;;  %v1538_v54 = vadd.f32 %v2164_v24, %v1537_v50  ;;  %v1566_v62 = vmax.f32 %v1546_v56, 0.0  ;;  %2704 = vmatpush3.bf16.msra.mxu0 %v2811_v16  ;;  %v2816_v16 = vld [vmem:[#allocation4 + $0x38] sm:$0xff]  }
 0x720   :  { %v2644_v53 = vpop.f32.mrf.mxu1  ;;  %2705 = vmatprep.subr.bf16.mxu0 %v2879_v8 }
 0x721   :  { %v1549_v55 = vadd.f32 %v2644_v53, %v2164_v24  ;;  %2669 = vmatprep.mubr.bf16.mxu0 %v1572_v51  ;;  %v1564_v60 = vmax.f32 %v1538_v54, 0.0 }
 0x722   :  { %v1540_v57 = vpop.f32.mrf.mxu1  ;;  %2670 = vmatmul.mubr.bf16.gmra.mxu0 %v1573_v52 }
 0x723   :  { %v1541_v59 = vadd.f32 %v2164_v24, %v1540_v57  ;;  %v1567_v58 = vmax.f32 %v1549_v55, 0.0  ;;  %2706 = vmatpush3.bf16.msra.mxu0 %v2812_v22  ;;  %v2817_v22 = vld [vmem:[#allocation4 + $0x30] sm:$0xff]  }
 0x724   :  { %2707 = vmatprep.subr.bf16.mxu0 %v2879_v8 }
 0x725   :  { %v1565_v61 = vmax.f32 %v1541_v59, 0.0  ;;  %v1575_v6 = vpack.c.bf16 %v1567_v58, %v1566_v62 }
 0x727   :  { %v1574_v3 = vpack.c.bf16 %v1565_v61, %v1564_v60  ;;  %2708 = vmatpush3.bf16.msra.mxu0 %v2813_v4  ;;  %v2818_v4 = vld [vmem:[#allocation4 + $0x28] sm:$0xff]  }
 0x728   :  { %2709 = vmatprep.subr.bf16.mxu0 %v2879_v8 }
 0x729   :  { %2673 = vmatprep.mubr.bf16.mxu0 %v1574_v3 }
 0x72a   :  { %2674 = vmatmul.mubr.bf16.gmra.mxu0 %v1575_v6 }
 0x72b   :  { %2713 = vmatprep.mubr.msk.bf16.mxu0 %vm2880_vm0, %v2879_v8  ;;  %2710 = vmatpush3.bf16.msra.mxu0 %v2814_v9 }
 0x72c   :  { %2711 = vmatprep.subr.bf16.mxu0 %v2879_v8 }
 0x72f   :  { %2712 = vmatpush3.bf16.msra.mxu0 %v2815_v5 }
 0x7d2   :  { %v2663_v1 = vpop.f32.mrf.mxu0 }
 0x7d3   :  { %v1692_v54 = vadd.f32 %v2663_v1, %v2190_v33  ;;  %v2819_v1 = vld [vmem:[#allocation4 + $0x20] sm:$0xff]  }
 0x7d4   :  { %v1683_v23 = vpop.f32.mrf.mxu0 }
 0x7d5   :  { %v1748_v58 = vmax.f32 %v1692_v54, 0.0  ;;  %v1684_v60 = vadd.f32 %v2190_v33, %v1683_v23  ;;  %v2820_v23 = vld [vmem:[#allocation4 + $0x18] sm:$0xff]  }
 0x7d6   :  { %v2664_v24 = vpop.f32.mrf.mxu0 }
 0x7d7   :  { %v1695_v51 = vadd.f32 %v2664_v24, %v2190_v33  ;;  %v1746_v3 = vmax.f32 %v1684_v60, 0.0 }
 0x7d8   :  { %v1686_v25 = vpop.f32.mrf.mxu0 }
 0x7d9   :  { %v1749_v56 = vmax.f32 %v1695_v51, 0.0  ;;  %v1687_v57 = vadd.f32 %v2190_v33, %v1686_v25 }
 0x7da   :  { %v2667_v10 = vpop.f32.mrf.mxu0 }
 0x7db   :  { %v1708_v44 = vadd.f32 %v2667_v10, %v2190_v33  ;;  %v1765_v61 = vpack.c.bf16 %v1749_v56, %v1748_v58  ;;  %v1747_v62 = vmax.f32 %v1687_v57, 0.0 }
 0x7dc   :  { %v1699_v26 = vpop.f32.mrf.mxu0 }
 0x7dd   :  { %v1752_v49 = vmax.f32 %v1708_v44, 0.0  ;;  %v1700_v50 = vadd.f32 %v2190_v33, %v1699_v26  ;;  %v1764_v6 = vpack.c.bf16 %v1747_v62, %v1746_v3 }
 0x7de   :  { %v2668_v27 = vpop.f32.mrf.mxu0 }
 0x7df   :  { %v1711_v20 = vadd.f32 %v2668_v27, %v2190_v33  ;;  %v1750_v55 = vmax.f32 %v1700_v50, 0.0 }
 0x7e0   :  { %v1702_v28 = vpop.f32.mrf.mxu0 }
 0x7e1   :  { %v1753_v46 = vmax.f32 %v1711_v20, 0.0  ;;  %v1703_v47 = vadd.f32 %v2190_v33, %v1702_v28  ;;  %v2821_v28 = vld [vmem:[#allocation4 + $0x10] sm:$0xff]  }
 0x7e2   :  { %v2671_v29 = vpop.f32.mrf.mxu0 }
 0x7e3   :  { %v1724_v43 = vadd.f32 %v2671_v29, %v2190_v33  ;;  %v1767_v52 = vpack.c.bf16 %v1753_v46, %v1752_v49  ;;  %v1751_v53 = vmax.f32 %v1703_v47, 0.0  ;;  %v2822_v29 = vld [vmem:[#allocation4 + $0x8] sm:$0xff]  }
 0x7e4   :  { %v1715_v13 = vpop.f32.mrf.mxu0 }
 0x7e5   :  { %v1756_v18 = vmax.f32 %v1724_v43, 0.0  ;;  %v1716_v19 = vadd.f32 %v2190_v33, %v1715_v13  ;;  %v1766_v59 = vpack.c.bf16 %v1751_v53, %v1750_v55  ;;  %v2823_v13 = vld [vmem:[#allocation4] sm:$0xff]  }
 0x7e6   :  { %v2672_v31 = vpop.f32.mrf.mxu0 }
 0x7e7   :  { %v1727_v40 = vadd.f32 %v2672_v31, %v2190_v33  ;;  %v1754_v45 = vmax.f32 %v1716_v19, 0.0  ;;  %v2200_v31 = vld [vmem:[%s3414_s10] ss:$0 sm:$0xff] }
 0x7e8   :  { %v1718_v2 = vpop.f32.mrf.mxu0 }
 0x7e9   :  { %v1757_v14 = vmax.f32 %v1727_v40, 0.0  ;;  %v1719_v15 = vadd.f32 %v2190_v33, %v1718_v2 }
 0x7ea   :  { %v2675_v32 = vpop.f32.mrf.mxu0 }
 0x7eb   :  { %v1740_v63 = vadd.f32 %v2675_v32, %v2190_v33  ;;  %v1769_v21 = vpack.c.bf16 %v1757_v14, %v1756_v18  ;;  %v1755_v42 = vmax.f32 %v1719_v15, 0.0 }
 0x7ec   :  { %v1731_v11 = vpop.f32.mrf.mxu0 }
 0x7ed   :  { %v1760_v36 = vmax.f32 %v1740_v63, 0.0  ;;  %v1732_v37 = vadd.f32 %v2190_v33, %v1731_v11  ;;  %v1768_v48 = vpack.c.bf16 %v1755_v42, %v1754_v45 }
 0x7ee   :  { %v2676_v34 = vpop.f32.mrf.mxu0 }
 0x7ef   :  { %v1743_v35 = vadd.f32 %v2676_v34, %v2190_v33  ;;  %v1758_v30 = vmax.f32 %v1732_v37, 0.0 }
 0x7f0   :  { %v1734_v0 = vpop.f32.mrf.mxu0 }
 0x7f1   :  { %v1761_v38 = vmax.f32 %v1743_v35, 0.0  ;;  %v1735_v39 = vadd.f32 %v2190_v33, %v1734_v0 }
 0x7f3   :  { %v1771_v12 = vpack.c.bf16 %v1761_v38, %v1760_v36  ;;  %v1759_v41 = vmax.f32 %v1735_v39, 0.0 }
 0x7f5   :  { %2678 = vmatpush3.bf16.msra.mxu1 %v1771_v12  ;;  %v1770_v17 = vpack.c.bf16 %v1759_v41, %v1758_v30 }
 0x7f6   :  { %2679 = vmatprep.subr.bf16.mxu1 %v2879_v8 }
 0x7f9   :  { %2680 = vmatpush3.bf16.msra.mxu1 %v1770_v17 }
 0x7fa   :  { %2681 = vmatprep.subr.bf16.mxu1 %v2879_v8 }
 0x7fd   :  { %2682 = vmatpush3.bf16.msra.mxu1 %v1769_v21 }
 0x7fe   :  { %2683 = vmatprep.subr.bf16.mxu1 %v2879_v8 }
 0x801   :  { %2684 = vmatpush3.bf16.msra.mxu1 %v1768_v48 }
 0x802   :  { %2685 = vmatprep.subr.bf16.mxu1 %v2879_v8 }
 0x805   :  { %2686 = vmatpush3.bf16.msra.mxu1 %v1767_v52 }
 0x806   :  { %2687 = vmatprep.subr.bf16.mxu1 %v2879_v8 }
 0x809   :  { %2688 = vmatpush3.bf16.msra.mxu1 %v1766_v59 }
 0x80a   :  { %2689 = vmatprep.subr.bf16.mxu1 %v2879_v8 }
 0x80d   :  { %2690 = vmatpush3.bf16.msra.mxu1 %v1765_v61 }
 0x80e   :  { %2691 = vmatprep.subr.bf16.mxu1 %v2879_v8 }
 0x811   :  { %2692 = vmatpush3.bf16.msra.mxu1 %v1764_v6 }
 0x812   :  { %2717 = vmatprep.subr.bf16.mxu1 %v2879_v8 }
 0x814   :  { %2694 = vmatmul.mubr.bf16.vlgmr.msra.gmra.mxu1 %v2807_v7 }
 0x815   :  { %2733 = vmatprep.mubr.msk.bf16.mxu1 %vm2880_vm0, %v2879_v8  ;;  %2718 = vmatpush3.bf16.msra.mxu1 %v2816_v16 }
 0x816   :  { %2719 = vmatprep.subr.bf16.mxu1 %v2879_v8 }
 0x819   :  { %2720 = vmatpush3.bf16.msra.mxu1 %v2817_v22 }
 0x81a   :  { %2721 = vmatprep.subr.bf16.mxu1 %v2879_v8 }
 0x81d   :  { %2722 = vmatpush3.bf16.msra.mxu1 %v2818_v4 }
 0x81e   :  { %2723 = vmatprep.subr.bf16.mxu1 %v2879_v8 }
 0x821   :  { %2724 = vmatpush3.bf16.msra.mxu1 %v2819_v1 }
 0x822   :  { %2725 = vmatprep.subr.bf16.mxu1 %v2879_v8 }
 0x825   :  { %2726 = vmatpush3.bf16.msra.mxu1 %v2820_v23 }
 0x826   :  { %2727 = vmatprep.subr.bf16.mxu1 %v2879_v8 }
 0x829   :  { %2728 = vmatpush3.bf16.msra.mxu1 %v2821_v28 }
 0x82a   :  { %2729 = vmatprep.subr.bf16.mxu1 %v2879_v8 }
 0x82d   :  { %2730 = vmatpush3.bf16.msra.mxu1 %v2822_v29 }
 0x82e   :  { %2731 = vmatprep.subr.bf16.mxu1 %v2879_v8  ;;  %v2209_v8 = vld [vmem:[%s3416_s12] ss:$0 sm:$0xff] }
 0x831   :  { %2732 = vmatpush3.bf16.msra.mxu1 %v2823_v13 }
 0x8d4   :  { %v1812_v24 = vpop.f32.mrf.mxu1 }
 0x8d6   :  { %v2695_v25 = vpop.f32.mrf.mxu1 }
 0x8d8   :  { %v1815_v10 = vpop.f32.mrf.mxu1 }
 0x8d9   :  { %v1819_v26 = vpack.c.bf16 %v1815_v10, %v1812_v24 }
 0x8da   :  { %v2696_v27 = vpop.f32.mrf.mxu1 }
 0x8db   :  { %2714 = vmatmul.mubr.bf16.vlgmr.msra.gmra.mxu0 %v1819_v26 }
 0x99b   :  { %v1925_v2 = vpop.f32.mrf.mxu0 }
 0x99c   :  { %v1926_v33 = vadd.f32 %v2200_v31, %v1925_v2 }
 0x99d   :  { %v2715_v32 = vpop.f32.mrf.mxu0 }
 0x99e   :  { %v1932_v35 = vmax.f32 %v1926_v33, 0.0 }
 0x99f   :  { %v1928_v11 = vpop.f32.mrf.mxu0 }
 0x9a0   :  { %v1929_v63 = vadd.f32 %v2200_v31, %v1928_v11 }
 0x9a1   :  { %v2716_v34 = vpop.f32.mrf.mxu0 }
 0x9a2   :  { %v1933_v0 = vmax.f32 %v1929_v63, 0.0 }
 0x9a4   :  { %v1934_v36 = vpack.c.bf16 %v1933_v0, %v1932_v35 }
 0x9a6   :  { %2734 = vmatmul.mubr.bf16.vlgmr.msra.gmra.mxu1 %v1934_v36 }
 0xa66   :  { %v2040_v37 = vpop.f32.mrf.mxu1 }
 0xa67   :  { %v2041_v38 = vadd.f32 %v2209_v8, %v2040_v37 }
 0xa68   :  { %v2735_v39 = vpop.f32.mrf.mxu1 }
 0xa69   :  { %2047 = vst [vmem:[%s3417_s13] sm:$0xff] %v2041_v38 }
 0xa6a   :  { %v2043_v40 = vpop.f32.mrf.mxu1 }
 0xa6b   :  { %v2044_v12 = vadd.f32 %v2209_v8, %v2043_v40 }
 0xa6c   :  { %v2736_v41 = vpop.f32.mrf.mxu1 }
 0xa6d   :  { %2048 = vst [vmem:[%s3417_s13 + $0x8] sm:$0xff] %v2044_v12 }
 0xa6e   :  { %2053 = vsyncpa [#allocation3], 1 }
 0xa6f   :  { %2054 = vsyncpa [#allocation5], 1 }

</bundles_post_ra>
